<compile_context>
chip_gen: v5e
topology: v5e:2x2
jax: 0.10.0
libtpu: 0.0.40
codegen_flags: <defaults>
</compile_context>

<pallas_src>
import functools
import math

import jax
import jax.numpy as jnp
import numpy as np
from jax.experimental import pallas as pl
from jax.experimental.pallas import tpu as pltpu


# ----------------------------------------------------------------------------
# Relative position index (identical to the PyTorch buffer construction).
# ----------------------------------------------------------------------------
def _relative_position_index(window_size):
    Wh, Ww = window_size
    coords = np.stack(np.meshgrid(np.arange(Wh), np.arange(Ww), indexing="ij"))
    coords_flatten = coords.reshape(2, -1)                       # (2, N)
    rel = coords_flatten[:, :, None] - coords_flatten[:, None, :]
    rel = rel.transpose(1, 2, 0).astype(np.int64)                # (N, N, 2)
    rel[:, :, 0] += Wh - 1
    rel[:, :, 1] += Ww - 1
    rel[:, :, 0] *= 2 * Ww - 1
    return rel.sum(-1)                                           # (N, N)


# ----------------------------------------------------------------------------
# Pallas kernel: one window per grid step.
# ----------------------------------------------------------------------------
def _window_attention_kernel(x_ref, wq_ref, wk_ref, wv_ref,
                             bq_ref, bk_ref, bv_ref,
                             bias_ref, wp_ref, bp_ref, o_ref, *, num_heads):
    x = x_ref[...]                                               # (N, C)
    n, c = x.shape
    acc = jnp.zeros((n, c), jnp.float32)

    for h in range(num_heads):                                   # static unroll
        q = jnp.dot(x, wq_ref[h], preferred_element_type=jnp.float32) + bq_ref[h]
        k = jnp.dot(x, wk_ref[h], preferred_element_type=jnp.float32) + bk_ref[h]
        v = jnp.dot(x, wv_ref[h], preferred_element_type=jnp.float32) + bv_ref[h]

        # attention scores (contraction over head_dim, no explicit transpose)
        s = jax.lax.dot_general(q, k, (((1,), (1,)), ((), ())),
                                preferred_element_type=jnp.float32)
        s = s + bias_ref[h]                                      # rel-pos bias (+ mask)

        # softmax over keys; divide routed to EUP via approximate reciprocal
        s = s - jnp.max(s, axis=-1, keepdims=True)
        e = jnp.exp(s)
        p = e * pl.reciprocal(jnp.sum(e, axis=-1, keepdims=True), approx=True)

        o_h = jnp.dot(p, v, preferred_element_type=jnp.float32)  # (N, hd)
        # fold the output projection per head: y = sum_h o_h @ Wp_h^T
        acc = acc + jnp.dot(o_h, wp_ref[h], preferred_element_type=jnp.float32)

    o_ref[...] = acc + bp_ref[...]


# ----------------------------------------------------------------------------
# Wrapper: parameter re-layout + pallas_call.
# ----------------------------------------------------------------------------
def window_attention_forward(x, params, window_size, num_heads, mask=None):
    """x: (B_, N, C) float32, N = Wh*Ww.  mask: (nW, N, N) additive or None."""
    B_, N, C = x.shape
    H = num_heads
    hd = C // H
    scale = hd ** -0.5
    Wh, Ww = window_size
    assert N == Wh * Ww

    # --- per-head weight layout (done once in the wrapper) -------------------
    qkv_w = params["qkv_w"].reshape(3, H, hd, C)                 # (3,H,hd,C)
    qkv_b = params["qkv_b"].reshape(3, H, hd)
    wq = jnp.transpose(qkv_w[0], (0, 2, 1)) * scale              # (H, C, hd) scale folded
    wk = jnp.transpose(qkv_w[1], (0, 2, 1))
    wv = jnp.transpose(qkv_w[2], (0, 2, 1))
    bq = (qkv_b[0] * scale).reshape(H, 1, hd)
    bk = qkv_b[1].reshape(H, 1, hd)
    bv = qkv_b[2].reshape(H, 1, hd)
    wp = jnp.transpose(params["proj_w"]).reshape(H, hd, C)       # (H, hd, C)
    bp = params["proj_b"].reshape(1, C)

    # --- relative position bias gather (data-dependent -> wrapper) -----------
    rel_idx = _relative_position_index(window_size)              # (N, N) numpy
    bias = params["rpb_table"][rel_idx.reshape(-1)]              # (N*N, H)
    bias = bias.reshape(N, N, H).transpose(2, 0, 1)              # (H, N, N)

    if mask is not None:
        nW = mask.shape[0]
        assert B_ % nW == 0
        bias_all = bias[None] + mask[:, None]                    # (nW, H, N, N)
        bias_map = lambda b: (jax.lax.rem(b, nW), 0, 0, 0)
    else:
        bias_all = bias[None]                                    # (1, H, N, N)
        bias_map = lambda b: (0, 0, 0, 0)

    def full(shape):
        return pl.BlockSpec(shape, lambda b, _s=shape: (0,) * len(_s))

    kernel = functools.partial(_window_attention_kernel, num_heads=H)
    out = pl.pallas_call(
        kernel,
        out_shape=jax.ShapeDtypeStruct((B_, N, C), jnp.float32),
        grid=(B_,),
        in_specs=[
            pl.BlockSpec((None, N, C), lambda b: (b, 0, 0)),     # x, one window
            full((H, C, hd)), full((H, C, hd)), full((H, C, hd)),
            full((H, 1, hd)), full((H, 1, hd)), full((H, 1, hd)),
            pl.BlockSpec((None, H, N, N), bias_map),             # bias (+mask)
            full((H, hd, C)), full((1, C)),
        ],
        out_specs=pl.BlockSpec((None, N, C), lambda b: (b, 0, 0)),
        compiler_params=pltpu.CompilerParams(
            dimension_semantics=("parallel",)),
    )(x.astype(jnp.float32), wq, wk, wv, bq, bk, bv,
      bias_all.astype(jnp.float32), wp, bp)
    return out


# ----------------------------------------------------------------------------
# Pure-JAX reference replicating the PyTorch forward.
# ----------------------------------------------------------------------------
def window_attention_reference(x, params, window_size, num_heads, mask=None):
    B_, N, C = x.shape
    hd = C // num_heads
    scale = hd ** -0.5
    qkv = x @ params["qkv_w"].T + params["qkv_b"]
    qkv = qkv.reshape(B_, N, 3, num_heads, hd).transpose(2, 0, 3, 1, 4)
    q, k, v = qkv[0], qkv[1], qkv[2]
    q = q * scale
    attn = jnp.einsum("bhnd,bhmd->bhnm", q, k)
    idx = _relative_position_index(window_size)
    bias = params["rpb_table"][idx.reshape(-1)].reshape(N, N, num_heads)
    attn = attn + bias.transpose(2, 0, 1)[None]
    if mask is not None:
        nW = mask.shape[0]
        attn = attn.reshape(B_ // nW, nW, num_heads, N, N) + mask[None, :, None]
        attn = attn.reshape(B_, num_heads, N, N)
    attn = jax.nn.softmax(attn, axis=-1)
    out = jnp.einsum("bhnm,bhmd->bhnd", attn, v)
    out = out.transpose(0, 2, 1, 3).reshape(B_, N, C)
    return out @ params["proj_w"].T + params["proj_b"]


def make_params(dim, num_heads, window_size, key):
    Wh, Ww = window_size
    k1, k2, k3, k4, k5 = jax.random.split(key, 5)
    bound = 1.0 / math.sqrt(dim)
    qkv_w = jax.random.uniform(k1, (3 * dim, dim), jnp.float32, -bound, bound)
    qkv_b = jax.random.uniform(k2, (3 * dim,), jnp.float32, -bound, bound)
    proj_w = jax.random.uniform(k3, (dim, dim), jnp.float32, -bound, bound)
    proj_b = jax.random.uniform(k4, (dim,), jnp.float32, -bound, bound)
    # trunc_normal_(std=0.02) approximation
    tbl = jnp.clip(jax.random.normal(
        k5, ((2 * Wh - 1) * (2 * Ww - 1), num_heads), jnp.float32),
        -2.0, 2.0) * 0.02
    return dict(qkv_w=qkv_w, qkv_b=qkv_b, proj_w=proj_w, proj_b=proj_b,
                rpb_table=tbl)


if __name__ == "__main__":
    dim, num_heads = 32, 4
    window_size = (8, 8)
    N = window_size[0] * window_size[1]
    B_ = 4                                   # e.g. 2 windows * batch 2

    key = jax.random.PRNGKey(0)
    kx, kp, km = jax.random.split(key, 3)
    x = jax.random.normal(kx, (B_, N, dim), jnp.float32)
    params = make_params(dim, num_heads, window_size, kp)

    # non-shifted path (mask=None)
    out = jax.block_until_ready(
        window_attention_forward(x, params, window_size, num_heads))
    ref = window_attention_reference(x, params, window_size, num_heads)
    np.testing.assert_allclose(np.asarray(out), np.asarray(ref),
                               rtol=2e-3, atol=2e-3)

    # shifted-window path (additive 0/-100 mask per window)
    nW = 2
    mask = jnp.where(jax.random.bernoulli(km, 0.5, (nW, N, N)), 0.0, -100.0)
    out_m = jax.block_until_ready(
        window_attention_forward(x, params, window_size, num_heads, mask=mask))
    ref_m = window_attention_reference(x, params, window_size, num_heads,
                                       mask=mask)
    np.testing.assert_allclose(np.asarray(out_m), np.asarray(ref_m),
                               rtol=2e-3, atol=2e-3)

    print("KERNEL_OK")
</pallas_src>

<mosaic_0001>
module attributes {stable_mosaic.version = 11 : i64} {
  func.func @_window_attention_kernel(%arg0: i32, %arg1: memref<1x64x32xf32, #tpu.memory_space<vmem>>, %arg2: memref<4x32x8xf32, #tpu.memory_space<vmem>>, %arg3: memref<4x32x8xf32, #tpu.memory_space<vmem>>, %arg4: memref<4x32x8xf32, #tpu.memory_space<vmem>>, %arg5: memref<4x1x8xf32, #tpu.memory_space<vmem>>, %arg6: memref<4x1x8xf32, #tpu.memory_space<vmem>>, %arg7: memref<4x1x8xf32, #tpu.memory_space<vmem>>, %arg8: memref<1x4x64x64xf32, #tpu.memory_space<vmem>>, %arg9: memref<4x8x32xf32, #tpu.memory_space<vmem>>, %arg10: memref<1x32xf32, #tpu.memory_space<vmem>>, %arg11: memref<1x64x32xf32, #tpu.memory_space<vmem>>) attributes {dimension_semantics = [#tpu.dimension_semantics<parallel>], iteration_bounds = array<i64: 4>, scalar_prefetch = 0 : i64, scratch_operands = 0 : i64, tpu.core_type = #tpu.core_type<tc>, window_params = [{transform_indices = @transform_0, window_bounds = array<i64: 1, 64, 32>}, {pipeline_mode = #tpu.pipeline_mode<synchronous>, transform_indices = @transform_1, window_bounds = array<i64: 4, 32, 8>}, {pipeline_mode = #tpu.pipeline_mode<synchronous>, transform_indices = @transform_2, window_bounds = array<i64: 4, 32, 8>}, {pipeline_mode = #tpu.pipeline_mode<synchronous>, transform_indices = @transform_3, window_bounds = array<i64: 4, 32, 8>}, {pipeline_mode = #tpu.pipeline_mode<synchronous>, transform_indices = @transform_4, window_bounds = array<i64: 4, 1, 8>}, {pipeline_mode = #tpu.pipeline_mode<synchronous>, transform_indices = @transform_5, window_bounds = array<i64: 4, 1, 8>}, {pipeline_mode = #tpu.pipeline_mode<synchronous>, transform_indices = @transform_6, window_bounds = array<i64: 4, 1, 8>}, {pipeline_mode = #tpu.pipeline_mode<synchronous>, transform_indices = @transform_7, window_bounds = array<i64: 1, 4, 64, 64>}, {pipeline_mode = #tpu.pipeline_mode<synchronous>, transform_indices = @transform_8, window_bounds = array<i64: 4, 8, 32>}, {pipeline_mode = #tpu.pipeline_mode<synchronous>, transform_indices = @transform_9, window_bounds = array<i64: 1, 32>}, {transform_indices = @transform_10, window_bounds = array<i64: 1, 64, 32>}]} {
    %c0 = arith.constant 0 : index
    %c0_0 = arith.constant 0 : index
    %c0_1 = arith.constant 0 : index
    %0 = vector.load %arg1[%c0, %c0_0, %c0_1] : memref<1x64x32xf32, #tpu.memory_space<vmem>>, vector<1x64x32xf32>
    %1 = vector.shape_cast %0 : vector<1x64x32xf32> to vector<64x32xf32>
    %cst = arith.constant 0.000000e+00 : f32
    %2 = vector.broadcast %cst : f32 to vector<64x32xf32>
    %c0_2 = arith.constant 0 : index
    %c0_3 = arith.constant 0 : index
    %c0_4 = arith.constant 0 : index
    %3 = vector.load %arg2[%c0_2, %c0_3, %c0_4] : memref<4x32x8xf32, #tpu.memory_space<vmem>>, vector<1x32x8xf32>
    %4 = vector.shape_cast %3 : vector<1x32x8xf32> to vector<32x8xf32>
    %cst_5 = arith.constant dense<0.000000e+00> : vector<64x8xf32>
    %5 = tpu.matmul %1, %4, %cst_5 {dimension_numbers = #tpu.dot_dimension_numbers<[1], [0], [0], [1], [0, 0, 1, 1], [], []>} : vector<64x32xf32>, vector<32x8xf32>, vector<64x8xf32> -> vector<64x8xf32>
    %c0_6 = arith.constant 0 : index
    %c0_7 = arith.constant 0 : index
    %c0_8 = arith.constant 0 : index
    %6 = vector.load %arg5[%c0_6, %c0_7, %c0_8] : memref<4x1x8xf32, #tpu.memory_space<vmem>>, vector<1x1x8xf32>
    %7 = vector.shape_cast %6 : vector<1x1x8xf32> to vector<1x8xf32>
    %8 = vector.broadcast %7 : vector<1x8xf32> to vector<64x8xf32>
    %9 = arith.addf %5, %8 : vector<64x8xf32>
    %c0_9 = arith.constant 0 : index
    %c0_10 = arith.constant 0 : index
    %c0_11 = arith.constant 0 : index
    %10 = vector.load %arg3[%c0_9, %c0_10, %c0_11] : memref<4x32x8xf32, #tpu.memory_space<vmem>>, vector<1x32x8xf32>
    %11 = vector.shape_cast %10 : vector<1x32x8xf32> to vector<32x8xf32>
    %cst_12 = arith.constant dense<0.000000e+00> : vector<64x8xf32>
    %12 = tpu.matmul %1, %11, %cst_12 {dimension_numbers = #tpu.dot_dimension_numbers<[1], [0], [0], [1], [0, 0, 1, 1], [], []>} : vector<64x32xf32>, vector<32x8xf32>, vector<64x8xf32> -> vector<64x8xf32>
    %c0_13 = arith.constant 0 : index
    %c0_14 = arith.constant 0 : index
    %c0_15 = arith.constant 0 : index
    %13 = vector.load %arg6[%c0_13, %c0_14, %c0_15] : memref<4x1x8xf32, #tpu.memory_space<vmem>>, vector<1x1x8xf32>
    %14 = vector.shape_cast %13 : vector<1x1x8xf32> to vector<1x8xf32>
    %15 = vector.broadcast %14 : vector<1x8xf32> to vector<64x8xf32>
    %16 = arith.addf %12, %15 : vector<64x8xf32>
    %c0_16 = arith.constant 0 : index
    %c0_17 = arith.constant 0 : index
    %c0_18 = arith.constant 0 : index
    %17 = vector.load %arg4[%c0_16, %c0_17, %c0_18] : memref<4x32x8xf32, #tpu.memory_space<vmem>>, vector<1x32x8xf32>
    %18 = vector.shape_cast %17 : vector<1x32x8xf32> to vector<32x8xf32>
    %cst_19 = arith.constant dense<0.000000e+00> : vector<64x8xf32>
    %19 = tpu.matmul %1, %18, %cst_19 {dimension_numbers = #tpu.dot_dimension_numbers<[1], [0], [0], [1], [0, 0, 1, 1], [], []>} : vector<64x32xf32>, vector<32x8xf32>, vector<64x8xf32> -> vector<64x8xf32>
    %c0_20 = arith.constant 0 : index
    %c0_21 = arith.constant 0 : index
    %c0_22 = arith.constant 0 : index
    %20 = vector.load %arg7[%c0_20, %c0_21, %c0_22] : memref<4x1x8xf32, #tpu.memory_space<vmem>>, vector<1x1x8xf32>
    %21 = vector.shape_cast %20 : vector<1x1x8xf32> to vector<1x8xf32>
    %22 = vector.broadcast %21 : vector<1x8xf32> to vector<64x8xf32>
    %23 = arith.addf %19, %22 : vector<64x8xf32>
    %cst_23 = arith.constant dense<0.000000e+00> : vector<64x64xf32>
    %24 = tpu.matmul %9, %16, %cst_23 {dimension_numbers = #tpu.dot_dimension_numbers<[1], [1], [0], [0], [0, 0, 1, 0], [], []>} : vector<64x8xf32>, vector<64x8xf32>, vector<64x64xf32> -> vector<64x64xf32>
    %c0_24 = arith.constant 0 : index
    %c0_25 = arith.constant 0 : index
    %c0_26 = arith.constant 0 : index
    %c0_27 = arith.constant 0 : index
    %25 = vector.load %arg8[%c0_24, %c0_25, %c0_26, %c0_27] : memref<1x4x64x64xf32, #tpu.memory_space<vmem>>, vector<1x1x64x64xf32>
    %26 = vector.shape_cast %25 : vector<1x1x64x64xf32> to vector<64x64xf32>
    %27 = arith.addf %24, %26 : vector<64x64xf32>
    %cst_28 = arith.constant dense<0xFF800000> : vector<64xf32>
    %28 = vector.multi_reduction <maximumf>, %27, %cst_28 [1] : vector<64x64xf32> to vector<64xf32>
    %29 = vector.shape_cast %28 : vector<64xf32> to vector<64x1xf32>
    %30 = vector.broadcast %29 : vector<64x1xf32> to vector<64x64xf32>
    %31 = arith.subf %27, %30 : vector<64x64xf32>
    %32 = math.exp %31 : vector<64x64xf32>
    %cst_29 = arith.constant dense<0.000000e+00> : vector<64xf32>
    %33 = vector.multi_reduction <add>, %32, %cst_29 [1] : vector<64x64xf32> to vector<64xf32>
    %34 = vector.shape_cast %33 : vector<64xf32> to vector<64x1xf32>
    %35 = tpu.reciprocal %34 {approx = true} : vector<64x1xf32> -> vector<64x1xf32>
    %36 = vector.broadcast %35 : vector<64x1xf32> to vector<64x64xf32>
    %37 = arith.mulf %32, %36 : vector<64x64xf32>
    %cst_30 = arith.constant dense<0.000000e+00> : vector<64x8xf32>
    %38 = tpu.matmul %37, %23, %cst_30 {dimension_numbers = #tpu.dot_dimension_numbers<[1], [0], [0], [1], [0, 0, 1, 1], [], []>} : vector<64x64xf32>, vector<64x8xf32>, vector<64x8xf32> -> vector<64x8xf32>
    %c0_31 = arith.constant 0 : index
    %c0_32 = arith.constant 0 : index
    %c0_33 = arith.constant 0 : index
    %39 = vector.load %arg9[%c0_31, %c0_32, %c0_33] : memref<4x8x32xf32, #tpu.memory_space<vmem>>, vector<1x8x32xf32>
    %40 = vector.shape_cast %39 : vector<1x8x32xf32> to vector<8x32xf32>
    %cst_34 = arith.constant dense<0.000000e+00> : vector<64x32xf32>
    %41 = tpu.matmul %38, %40, %cst_34 {dimension_numbers = #tpu.dot_dimension_numbers<[1], [0], [0], [1], [0, 0, 1, 1], [], []>} : vector<64x8xf32>, vector<8x32xf32>, vector<64x32xf32> -> vector<64x32xf32>
    %42 = arith.addf %2, %41 : vector<64x32xf32>
    %c1 = arith.constant 1 : index
    %c0_35 = arith.constant 0 : index
    %c0_36 = arith.constant 0 : index
    %43 = vector.load %arg2[%c1, %c0_35, %c0_36] : memref<4x32x8xf32, #tpu.memory_space<vmem>>, vector<1x32x8xf32>
    %44 = vector.shape_cast %43 : vector<1x32x8xf32> to vector<32x8xf32>
    %cst_37 = arith.constant dense<0.000000e+00> : vector<64x8xf32>
    %45 = tpu.matmul %1, %44, %cst_37 {dimension_numbers = #tpu.dot_dimension_numbers<[1], [0], [0], [1], [0, 0, 1, 1], [], []>} : vector<64x32xf32>, vector<32x8xf32>, vector<64x8xf32> -> vector<64x8xf32>
    %c1_38 = arith.constant 1 : index
    %c0_39 = arith.constant 0 : index
    %c0_40 = arith.constant 0 : index
    %46 = vector.load %arg5[%c1_38, %c0_39, %c0_40] : memref<4x1x8xf32, #tpu.memory_space<vmem>>, vector<1x1x8xf32>
    %47 = vector.shape_cast %46 : vector<1x1x8xf32> to vector<1x8xf32>
    %48 = vector.broadcast %47 : vector<1x8xf32> to vector<64x8xf32>
    %49 = arith.addf %45, %48 : vector<64x8xf32>
    %c1_41 = arith.constant 1 : index
    %c0_42 = arith.constant 0 : index
    %c0_43 = arith.constant 0 : index
    %50 = vector.load %arg3[%c1_41, %c0_42, %c0_43] : memref<4x32x8xf32, #tpu.memory_space<vmem>>, vector<1x32x8xf32>
    %51 = vector.shape_cast %50 : vector<1x32x8xf32> to vector<32x8xf32>
    %cst_44 = arith.constant dense<0.000000e+00> : vector<64x8xf32>
    %52 = tpu.matmul %1, %51, %cst_44 {dimension_numbers = #tpu.dot_dimension_numbers<[1], [0], [0], [1], [0, 0, 1, 1], [], []>} : vector<64x32xf32>, vector<32x8xf32>, vector<64x8xf32> -> vector<64x8xf32>
    %c1_45 = arith.constant 1 : index
    %c0_46 = arith.constant 0 : index
    %c0_47 = arith.constant 0 : index
    %53 = vector.load %arg6[%c1_45, %c0_46, %c0_47] : memref<4x1x8xf32, #tpu.memory_space<vmem>>, vector<1x1x8xf32>
    %54 = vector.shape_cast %53 : vector<1x1x8xf32> to vector<1x8xf32>
    %55 = vector.broadcast %54 : vector<1x8xf32> to vector<64x8xf32>
    %56 = arith.addf %52, %55 : vector<64x8xf32>
    %c1_48 = arith.constant 1 : index
    %c0_49 = arith.constant 0 : index
    %c0_50 = arith.constant 0 : index
    %57 = vector.load %arg4[%c1_48, %c0_49, %c0_50] : memref<4x32x8xf32, #tpu.memory_space<vmem>>, vector<1x32x8xf32>
    %58 = vector.shape_cast %57 : vector<1x32x8xf32> to vector<32x8xf32>
    %cst_51 = arith.constant dense<0.000000e+00> : vector<64x8xf32>
    %59 = tpu.matmul %1, %58, %cst_51 {dimension_numbers = #tpu.dot_dimension_numbers<[1], [0], [0], [1], [0, 0, 1, 1], [], []>} : vector<64x32xf32>, vector<32x8xf32>, vector<64x8xf32> -> vector<64x8xf32>
    %c1_52 = arith.constant 1 : index
    %c0_53 = arith.constant 0 : index
    %c0_54 = arith.constant 0 : index
    %60 = vector.load %arg7[%c1_52, %c0_53, %c0_54] : memref<4x1x8xf32, #tpu.memory_space<vmem>>, vector<1x1x8xf32>
    %61 = vector.shape_cast %60 : vector<1x1x8xf32> to vector<1x8xf32>
    %62 = vector.broadcast %61 : vector<1x8xf32> to vector<64x8xf32>
    %63 = arith.addf %59, %62 : vector<64x8xf32>
    %cst_55 = arith.constant dense<0.000000e+00> : vector<64x64xf32>
    %64 = tpu.matmul %49, %56, %cst_55 {dimension_numbers = #tpu.dot_dimension_numbers<[1], [1], [0], [0], [0, 0, 1, 0], [], []>} : vector<64x8xf32>, vector<64x8xf32>, vector<64x64xf32> -> vector<64x64xf32>
    %c0_56 = arith.constant 0 : index
    %c1_57 = arith.constant 1 : index
    %c0_58 = arith.constant 0 : index
    %c0_59 = arith.constant 0 : index
    %65 = vector.load %arg8[%c0_56, %c1_57, %c0_58, %c0_59] : memref<1x4x64x64xf32, #tpu.memory_space<vmem>>, vector<1x1x64x64xf32>
    %66 = vector.shape_cast %65 : vector<1x1x64x64xf32> to vector<64x64xf32>
    %67 = arith.addf %64, %66 : vector<64x64xf32>
    %cst_60 = arith.constant dense<0xFF800000> : vector<64xf32>
    %68 = vector.multi_reduction <maximumf>, %67, %cst_60 [1] : vector<64x64xf32> to vector<64xf32>
    %69 = vector.shape_cast %68 : vector<64xf32> to vector<64x1xf32>
    %70 = vector.broadcast %69 : vector<64x1xf32> to vector<64x64xf32>
    %71 = arith.subf %67, %70 : vector<64x64xf32>
    %72 = math.exp %71 : vector<64x64xf32>
    %cst_61 = arith.constant dense<0.000000e+00> : vector<64xf32>
    %73 = vector.multi_reduction <add>, %72, %cst_61 [1] : vector<64x64xf32> to vector<64xf32>
    %74 = vector.shape_cast %73 : vector<64xf32> to vector<64x1xf32>
    %75 = tpu.reciprocal %74 {approx = true} : vector<64x1xf32> -> vector<64x1xf32>
    %76 = vector.broadcast %75 : vector<64x1xf32> to vector<64x64xf32>
    %77 = arith.mulf %72, %76 : vector<64x64xf32>
    %cst_62 = arith.constant dense<0.000000e+00> : vector<64x8xf32>
    %78 = tpu.matmul %77, %63, %cst_62 {dimension_numbers = #tpu.dot_dimension_numbers<[1], [0], [0], [1], [0, 0, 1, 1], [], []>} : vector<64x64xf32>, vector<64x8xf32>, vector<64x8xf32> -> vector<64x8xf32>
    %c1_63 = arith.constant 1 : index
    %c0_64 = arith.constant 0 : index
    %c0_65 = arith.constant 0 : index
    %79 = vector.load %arg9[%c1_63, %c0_64, %c0_65] : memref<4x8x32xf32, #tpu.memory_space<vmem>>, vector<1x8x32xf32>
    %80 = vector.shape_cast %79 : vector<1x8x32xf32> to vector<8x32xf32>
    %cst_66 = arith.constant dense<0.000000e+00> : vector<64x32xf32>
    %81 = tpu.matmul %78, %80, %cst_66 {dimension_numbers = #tpu.dot_dimension_numbers<[1], [0], [0], [1], [0, 0, 1, 1], [], []>} : vector<64x8xf32>, vector<8x32xf32>, vector<64x32xf32> -> vector<64x32xf32>
    %82 = arith.addf %42, %81 : vector<64x32xf32>
    %c2 = arith.constant 2 : index
    %c0_67 = arith.constant 0 : index
    %c0_68 = arith.constant 0 : index
    %83 = vector.load %arg2[%c2, %c0_67, %c0_68] : memref<4x32x8xf32, #tpu.memory_space<vmem>>, vector<1x32x8xf32>
    %84 = vector.shape_cast %83 : vector<1x32x8xf32> to vector<32x8xf32>
    %cst_69 = arith.constant dense<0.000000e+00> : vector<64x8xf32>
    %85 = tpu.matmul %1, %84, %cst_69 {dimension_numbers = #tpu.dot_dimension_numbers<[1], [0], [0], [1], [0, 0, 1, 1], [], []>} : vector<64x32xf32>, vector<32x8xf32>, vector<64x8xf32> -> vector<64x8xf32>
    %c2_70 = arith.constant 2 : index
    %c0_71 = arith.constant 0 : index
    %c0_72 = arith.constant 0 : index
    %86 = vector.load %arg5[%c2_70, %c0_71, %c0_72] : memref<4x1x8xf32, #tpu.memory_space<vmem>>, vector<1x1x8xf32>
    %87 = vector.shape_cast %86 : vector<1x1x8xf32> to vector<1x8xf32>
    %88 = vector.broadcast %87 : vector<1x8xf32> to vector<64x8xf32>
    %89 = arith.addf %85, %88 : vector<64x8xf32>
    %c2_73 = arith.constant 2 : index
    %c0_74 = arith.constant 0 : index
    %c0_75 = arith.constant 0 : index
    %90 = vector.load %arg3[%c2_73, %c0_74, %c0_75] : memref<4x32x8xf32, #tpu.memory_space<vmem>>, vector<1x32x8xf32>
    %91 = vector.shape_cast %90 : vector<1x32x8xf32> to vector<32x8xf32>
    %cst_76 = arith.constant dense<0.000000e+00> : vector<64x8xf32>
    %92 = tpu.matmul %1, %91, %cst_76 {dimension_numbers = #tpu.dot_dimension_numbers<[1], [0], [0], [1], [0, 0, 1, 1], [], []>} : vector<64x32xf32>, vector<32x8xf32>, vector<64x8xf32> -> vector<64x8xf32>
    %c2_77 = arith.constant 2 : index
    %c0_78 = arith.constant 0 : index
    %c0_79 = arith.constant 0 : index
    %93 = vector.load %arg6[%c2_77, %c0_78, %c0_79] : memref<4x1x8xf32, #tpu.memory_space<vmem>>, vector<1x1x8xf32>
    %94 = vector.shape_cast %93 : vector<1x1x8xf32> to vector<1x8xf32>
    %95 = vector.broadcast %94 : vector<1x8xf32> to vector<64x8xf32>
    %96 = arith.addf %92, %95 : vector<64x8xf32>
    %c2_80 = arith.constant 2 : index
    %c0_81 = arith.constant 0 : index
    %c0_82 = arith.constant 0 : index
    %97 = vector.load %arg4[%c2_80, %c0_81, %c0_82] : memref<4x32x8xf32, #tpu.memory_space<vmem>>, vector<1x32x8xf32>
    %98 = vector.shape_cast %97 : vector<1x32x8xf32> to vector<32x8xf32>
    %cst_83 = arith.constant dense<0.000000e+00> : vector<64x8xf32>
    %99 = tpu.matmul %1, %98, %cst_83 {dimension_numbers = #tpu.dot_dimension_numbers<[1], [0], [0], [1], [0, 0, 1, 1], [], []>} : vector<64x32xf32>, vector<32x8xf32>, vector<64x8xf32> -> vector<64x8xf32>
    %c2_84 = arith.constant 2 : index
    %c0_85 = arith.constant 0 : index
    %c0_86 = arith.constant 0 : index
    %100 = vector.load %arg7[%c2_84, %c0_85, %c0_86] : memref<4x1x8xf32, #tpu.memory_space<vmem>>, vector<1x1x8xf32>
    %101 = vector.shape_cast %100 : vector<1x1x8xf32> to vector<1x8xf32>
    %102 = vector.broadcast %101 : vector<1x8xf32> to vector<64x8xf32>
    %103 = arith.addf %99, %102 : vector<64x8xf32>
    %cst_87 = arith.constant dense<0.000000e+00> : vector<64x64xf32>
    %104 = tpu.matmul %89, %96, %cst_87 {dimension_numbers = #tpu.dot_dimension_numbers<[1], [1], [0], [0], [0, 0, 1, 0], [], []>} : vector<64x8xf32>, vector<64x8xf32>, vector<64x64xf32> -> vector<64x64xf32>
    %c0_88 = arith.constant 0 : index
    %c2_89 = arith.constant 2 : index
    %c0_90 = arith.constant 0 : index
    %c0_91 = arith.constant 0 : index
    %105 = vector.load %arg8[%c0_88, %c2_89, %c0_90, %c0_91] : memref<1x4x64x64xf32, #tpu.memory_space<vmem>>, vector<1x1x64x64xf32>
    %106 = vector.shape_cast %105 : vector<1x1x64x64xf32> to vector<64x64xf32>
    %107 = arith.addf %104, %106 : vector<64x64xf32>
    %cst_92 = arith.constant dense<0xFF800000> : vector<64xf32>
    %108 = vector.multi_reduction <maximumf>, %107, %cst_92 [1] : vector<64x64xf32> to vector<64xf32>
    %109 = vector.shape_cast %108 : vector<64xf32> to vector<64x1xf32>
    %110 = vector.broadcast %109 : vector<64x1xf32> to vector<64x64xf32>
    %111 = arith.subf %107, %110 : vector<64x64xf32>
    %112 = math.exp %111 : vector<64x64xf32>
    %cst_93 = arith.constant dense<0.000000e+00> : vector<64xf32>
    %113 = vector.multi_reduction <add>, %112, %cst_93 [1] : vector<64x64xf32> to vector<64xf32>
    %114 = vector.shape_cast %113 : vector<64xf32> to vector<64x1xf32>
    %115 = tpu.reciprocal %114 {approx = true} : vector<64x1xf32> -> vector<64x1xf32>
    %116 = vector.broadcast %115 : vector<64x1xf32> to vector<64x64xf32>
    %117 = arith.mulf %112, %116 : vector<64x64xf32>
    %cst_94 = arith.constant dense<0.000000e+00> : vector<64x8xf32>
    %118 = tpu.matmul %117, %103, %cst_94 {dimension_numbers = #tpu.dot_dimension_numbers<[1], [0], [0], [1], [0, 0, 1, 1], [], []>} : vector<64x64xf32>, vector<64x8xf32>, vector<64x8xf32> -> vector<64x8xf32>
    %c2_95 = arith.constant 2 : index
    %c0_96 = arith.constant 0 : index
    %c0_97 = arith.constant 0 : index
    %119 = vector.load %arg9[%c2_95, %c0_96, %c0_97] : memref<4x8x32xf32, #tpu.memory_space<vmem>>, vector<1x8x32xf32>
    %120 = vector.shape_cast %119 : vector<1x8x32xf32> to vector<8x32xf32>
    %cst_98 = arith.constant dense<0.000000e+00> : vector<64x32xf32>
    %121 = tpu.matmul %118, %120, %cst_98 {dimension_numbers = #tpu.dot_dimension_numbers<[1], [0], [0], [1], [0, 0, 1, 1], [], []>} : vector<64x8xf32>, vector<8x32xf32>, vector<64x32xf32> -> vector<64x32xf32>
    %122 = arith.addf %82, %121 : vector<64x32xf32>
    %c3 = arith.constant 3 : index
    %c0_99 = arith.constant 0 : index
    %c0_100 = arith.constant 0 : index
    %123 = vector.load %arg2[%c3, %c0_99, %c0_100] : memref<4x32x8xf32, #tpu.memory_space<vmem>>, vector<1x32x8xf32>
    %124 = vector.shape_cast %123 : vector<1x32x8xf32> to vector<32x8xf32>
    %cst_101 = arith.constant dense<0.000000e+00> : vector<64x8xf32>
    %125 = tpu.matmul %1, %124, %cst_101 {dimension_numbers = #tpu.dot_dimension_numbers<[1], [0], [0], [1], [0, 0, 1, 1], [], []>} : vector<64x32xf32>, vector<32x8xf32>, vector<64x8xf32> -> vector<64x8xf32>
    %c3_102 = arith.constant 3 : index
    %c0_103 = arith.constant 0 : index
    %c0_104 = arith.constant 0 : index
    %126 = vector.load %arg5[%c3_102, %c0_103, %c0_104] : memref<4x1x8xf32, #tpu.memory_space<vmem>>, vector<1x1x8xf32>
    %127 = vector.shape_cast %126 : vector<1x1x8xf32> to vector<1x8xf32>
    %128 = vector.broadcast %127 : vector<1x8xf32> to vector<64x8xf32>
    %129 = arith.addf %125, %128 : vector<64x8xf32>
    %c3_105 = arith.constant 3 : index
    %c0_106 = arith.constant 0 : index
    %c0_107 = arith.constant 0 : index
    %130 = vector.load %arg3[%c3_105, %c0_106, %c0_107] : memref<4x32x8xf32, #tpu.memory_space<vmem>>, vector<1x32x8xf32>
    %131 = vector.shape_cast %130 : vector<1x32x8xf32> to vector<32x8xf32>
    %cst_108 = arith.constant dense<0.000000e+00> : vector<64x8xf32>
    %132 = tpu.matmul %1, %131, %cst_108 {dimension_numbers = #tpu.dot_dimension_numbers<[1], [0], [0], [1], [0, 0, 1, 1], [], []>} : vector<64x32xf32>, vector<32x8xf32>, vector<64x8xf32> -> vector<64x8xf32>
    %c3_109 = arith.constant 3 : index
    %c0_110 = arith.constant 0 : index
    %c0_111 = arith.constant 0 : index
    %133 = vector.load %arg6[%c3_109, %c0_110, %c0_111] : memref<4x1x8xf32, #tpu.memory_space<vmem>>, vector<1x1x8xf32>
    %134 = vector.shape_cast %133 : vector<1x1x8xf32> to vector<1x8xf32>
    %135 = vector.broadcast %134 : vector<1x8xf32> to vector<64x8xf32>
    %136 = arith.addf %132, %135 : vector<64x8xf32>
    %c3_112 = arith.constant 3 : index
    %c0_113 = arith.constant 0 : index
    %c0_114 = arith.constant 0 : index
    %137 = vector.load %arg4[%c3_112, %c0_113, %c0_114] : memref<4x32x8xf32, #tpu.memory_space<vmem>>, vector<1x32x8xf32>
    %138 = vector.shape_cast %137 : vector<1x32x8xf32> to vector<32x8xf32>
    %cst_115 = arith.constant dense<0.000000e+00> : vector<64x8xf32>
    %139 = tpu.matmul %1, %138, %cst_115 {dimension_numbers = #tpu.dot_dimension_numbers<[1], [0], [0], [1], [0, 0, 1, 1], [], []>} : vector<64x32xf32>, vector<32x8xf32>, vector<64x8xf32> -> vector<64x8xf32>
    %c3_116 = arith.constant 3 : index
    %c0_117 = arith.constant 0 : index
    %c0_118 = arith.constant 0 : index
    %140 = vector.load %arg7[%c3_116, %c0_117, %c0_118] : memref<4x1x8xf32, #tpu.memory_space<vmem>>, vector<1x1x8xf32>
    %141 = vector.shape_cast %140 : vector<1x1x8xf32> to vector<1x8xf32>
    %142 = vector.broadcast %141 : vector<1x8xf32> to vector<64x8xf32>
    %143 = arith.addf %139, %142 : vector<64x8xf32>
    %cst_119 = arith.constant dense<0.000000e+00> : vector<64x64xf32>
    %144 = tpu.matmul %129, %136, %cst_119 {dimension_numbers = #tpu.dot_dimension_numbers<[1], [1], [0], [0], [0, 0, 1, 0], [], []>} : vector<64x8xf32>, vector<64x8xf32>, vector<64x64xf32> -> vector<64x64xf32>
    %c0_120 = arith.constant 0 : index
    %c3_121 = arith.constant 3 : index
    %c0_122 = arith.constant 0 : index
    %c0_123 = arith.constant 0 : index
    %145 = vector.load %arg8[%c0_120, %c3_121, %c0_122, %c0_123] : memref<1x4x64x64xf32, #tpu.memory_space<vmem>>, vector<1x1x64x64xf32>
    %146 = vector.shape_cast %145 : vector<1x1x64x64xf32> to vector<64x64xf32>
    %147 = arith.addf %144, %146 : vector<64x64xf32>
    %cst_124 = arith.constant dense<0xFF800000> : vector<64xf32>
    %148 = vector.multi_reduction <maximumf>, %147, %cst_124 [1] : vector<64x64xf32> to vector<64xf32>
    %149 = vector.shape_cast %148 : vector<64xf32> to vector<64x1xf32>
    %150 = vector.broadcast %149 : vector<64x1xf32> to vector<64x64xf32>
    %151 = arith.subf %147, %150 : vector<64x64xf32>
    %152 = math.exp %151 : vector<64x64xf32>
    %cst_125 = arith.constant dense<0.000000e+00> : vector<64xf32>
    %153 = vector.multi_reduction <add>, %152, %cst_125 [1] : vector<64x64xf32> to vector<64xf32>
    %154 = vector.shape_cast %153 : vector<64xf32> to vector<64x1xf32>
    %155 = tpu.reciprocal %154 {approx = true} : vector<64x1xf32> -> vector<64x1xf32>
    %156 = vector.broadcast %155 : vector<64x1xf32> to vector<64x64xf32>
    %157 = arith.mulf %152, %156 : vector<64x64xf32>
    %cst_126 = arith.constant dense<0.000000e+00> : vector<64x8xf32>
    %158 = tpu.matmul %157, %143, %cst_126 {dimension_numbers = #tpu.dot_dimension_numbers<[1], [0], [0], [1], [0, 0, 1, 1], [], []>} : vector<64x64xf32>, vector<64x8xf32>, vector<64x8xf32> -> vector<64x8xf32>
    %c3_127 = arith.constant 3 : index
    %c0_128 = arith.constant 0 : index
    %c0_129 = arith.constant 0 : index
    %159 = vector.load %arg9[%c3_127, %c0_128, %c0_129] : memref<4x8x32xf32, #tpu.memory_space<vmem>>, vector<1x8x32xf32>
    %160 = vector.shape_cast %159 : vector<1x8x32xf32> to vector<8x32xf32>
    %cst_130 = arith.constant dense<0.000000e+00> : vector<64x32xf32>
    %161 = tpu.matmul %158, %160, %cst_130 {dimension_numbers = #tpu.dot_dimension_numbers<[1], [0], [0], [1], [0, 0, 1, 1], [], []>} : vector<64x8xf32>, vector<8x32xf32>, vector<64x32xf32> -> vector<64x32xf32>
    %162 = arith.addf %122, %161 : vector<64x32xf32>
    %c0_131 = arith.constant 0 : index
    %c0_132 = arith.constant 0 : index
    %163 = vector.load %arg10[%c0_131, %c0_132] : memref<1x32xf32, #tpu.memory_space<vmem>>, vector<1x32xf32>
    %164 = vector.broadcast %163 : vector<1x32xf32> to vector<64x32xf32>
    %165 = arith.addf %162, %164 : vector<64x32xf32>
    %c0_133 = arith.constant 0 : index
    %c0_134 = arith.constant 0 : index
    %c0_135 = arith.constant 0 : index
    %166 = vector.load %arg11[%c0_133, %c0_134, %c0_135] : memref<1x64x32xf32, #tpu.memory_space<vmem>>, vector<1x64x32xf32>
    %167 = vector.shape_cast %166 : vector<1x64x32xf32> to vector<64x32xf32>
    %168 = vector.shape_cast %165 : vector<64x32xf32> to vector<1x64x32xf32>
    tpu.vector_store %arg11[%c0_133, %c0_134, %c0_135], %168 {strides = array<i32>} : memref<1x64x32xf32, #tpu.memory_space<vmem>>, vector<1x64x32xf32>,
    return
  }
  func.func @transform_0(%arg0: i32) -> (i32, i32, i32) {
    %c0_i32 = arith.constant 0 : i32
    %c0_i32_0 = arith.constant 0 : i32
    %c0_i32_1 = arith.constant 0 : i32
    return %arg0, %c0_i32, %c0_i32_0 : i32, i32, i32
  }
  func.func @transform_1(%arg0: i32) -> (i32, i32, i32) {
    %c0_i32 = arith.constant 0 : i32
    %c0_i32_0 = arith.constant 0 : i32
    %c0_i32_1 = arith.constant 0 : i32
    %c0_i32_2 = arith.constant 0 : i32
    return %c0_i32, %c0_i32_0, %c0_i32_1 : i32, i32, i32
  }
  func.func @transform_2(%arg0: i32) -> (i32, i32, i32) {
    %c0_i32 = arith.constant 0 : i32
    %c0_i32_0 = arith.constant 0 : i32
    %c0_i32_1 = arith.constant 0 : i32
    %c0_i32_2 = arith.constant 0 : i32
    return %c0_i32, %c0_i32_0, %c0_i32_1 : i32, i32, i32
  }
  func.func @transform_3(%arg0: i32) -> (i32, i32, i32) {
    %c0_i32 = arith.constant 0 : i32
    %c0_i32_0 = arith.constant 0 : i32
    %c0_i32_1 = arith.constant 0 : i32
    %c0_i32_2 = arith.constant 0 : i32
    return %c0_i32, %c0_i32_0, %c0_i32_1 : i32, i32, i32
  }
  func.func @transform_4(%arg0: i32) -> (i32, i32, i32) {
    %c0_i32 = arith.constant 0 : i32
    %c0_i32_0 = arith.constant 0 : i32
    %c0_i32_1 = arith.constant 0 : i32
    %c0_i32_2 = arith.constant 0 : i32
    return %c0_i32, %c0_i32_0, %c0_i32_1 : i32, i32, i32
  }
  func.func @transform_5(%arg0: i32) -> (i32, i32, i32) {
    %c0_i32 = arith.constant 0 : i32
    %c0_i32_0 = arith.constant 0 : i32
    %c0_i32_1 = arith.constant 0 : i32
    %c0_i32_2 = arith.constant 0 : i32
    return %c0_i32, %c0_i32_0, %c0_i32_1 : i32, i32, i32
  }
  func.func @transform_6(%arg0: i32) -> (i32, i32, i32) {
    %c0_i32 = arith.constant 0 : i32
    %c0_i32_0 = arith.constant 0 : i32
    %c0_i32_1 = arith.constant 0 : i32
    %c0_i32_2 = arith.constant 0 : i32
    return %c0_i32, %c0_i32_0, %c0_i32_1 : i32, i32, i32
  }
  func.func @transform_7(%arg0: i32) -> (i32, i32, i32, i32) {
    %c0_i32 = arith.constant 0 : i32
    %c0_i32_0 = arith.constant 0 : i32
    %c0_i32_1 = arith.constant 0 : i32
    %c0_i32_2 = arith.constant 0 : i32
    %c0_i32_3 = arith.constant 0 : i32
    return %c0_i32, %c0_i32_0, %c0_i32_1, %c0_i32_2 : i32, i32, i32, i32
  }
  func.func @transform_8(%arg0: i32) -> (i32, i32, i32) {
    %c0_i32 = arith.constant 0 : i32
    %c0_i32_0 = arith.constant 0 : i32
    %c0_i32_1 = arith.constant 0 : i32
    %c0_i32_2 = arith.constant 0 : i32
    return %c0_i32, %c0_i32_0, %c0_i32_1 : i32, i32, i32
  }
  func.func @transform_9(%arg0: i32) -> (i32, i32) {
    %c0_i32 = arith.constant 0 : i32
    %c0_i32_0 = arith.constant 0 : i32
    %c0_i32_1 = arith.constant 0 : i32
    return %c0_i32, %c0_i32_0 : i32, i32
  }
  func.func @transform_10(%arg0: i32) -> (i32, i32, i32) {
    %c0_i32 = arith.constant 0 : i32
    %c0_i32_0 = arith.constant 0 : i32
    %c0_i32_1 = arith.constant 0 : i32
    return %arg0, %c0_i32, %c0_i32_0 : i32, i32, i32
  }
}

</mosaic_0001>

<bundles_post_ra>
// kernel: tpu_custom_call.1
= control target key start
LH: loop header
LB: loop body
LE: loop exit
PB: predicated region body
PF: predicated region fallthrough
CT: control target
= control target key end

     0   :  { %s2903_s13 = smov 0   ;;  %s3920_s0 = inlined_call_operand.vmem [shape: f32[4,64,32], index: 0, kind: input, shape index: {}]   ;;  %s3921_s1 = inlined_call_operand.vmem [shape: f32[4,32,8], index: 1, kind: input, shape index: {}]   ;;  %s3922_s2 = inlined_call_operand.vmem [shape: f32[4,32,8], index: 2, kind: input, shape index: {}]   ;;  %s3923_s3 = inlined_call_operand.vmem [shape: f32[4,32,8], index: 3, kind: input, shape index: {}]   ;;  %s3924_s4 = inlined_call_operand.vmem [shape: f32[4,1,8], index: 4, kind: input, shape index: {}]   ;;  %s3925_s5 = inlined_call_operand.vmem [shape: f32[4,1,8], index: 5, kind: input, shape index: {}]   ;;  %s3926_s6 = inlined_call_operand.vmem [shape: f32[4,1,8], index: 6, kind: input, shape index: {}]   ;;  %s3927_s7 = inlined_call_operand.vmem [shape: f32[1,4,64,64], index: 7, kind: input, shape index: {}]   ;;  %s3928_s8 = inlined_call_operand.vmem [shape: f32[4,8,32], index: 8, kind: input, shape index: {}]   ;;  %s3929_s9 = inlined_call_operand.vmem [shape: f32[1,32], index: 9, kind: input, shape index: {}]   ;;  %s3930_s10 = inlined_call_operand.vmem [shape: f32[4,64,32], index: 10, kind: output, shape index: {}]  }
   0x1 LB: > { %s2362_s14 = sadd.s32 4294967295, %s2846_s13   ;;  %p2366_p0 = scmp.ge.s32.totalorder %s2846_s13, 1  ;;  %s2846_s13 = sphi %s2903_s13, %s20_s13  }
   0x2   : > { %p312_p1 = scmp.lt.s32.totalorder %s2846_s13, 5 }
   0x4   : > { %p313_p2 = pnand %p2366_p0, %p312_p1 }
   0x5   : > { %p350_p3 = scmp.lt.s32.totalorder (!%p313_p2), %s2362_s14, 3 }
   0x6   : > { %316 = sbr.rel (%p313_p2) target bundleno = 2634 (0xa4a), region = 60 }
   0xb   : > { %v371_v0 = vld [vmem:[%s3921_s1 + $0x18] sm:$0xff]  ;;  %v370_v1 = vld [vmem:[%s3921_s1 + $0x10] sm:$0xff]  ;;  %v369_v2 = vld [vmem:[%s3921_s1 + $0x8] sm:$0xff]  ;;  %s3932_s14 = smov (!%p350_p3, %s2362_s14), 3  ;;  %vm376_vm0 = vcmask 261120   ;;  %vm548_vm1 = vcmask 64512  }
   0xc   : > { %2671 = vmatpush.msra.mxu1 %v371_v0  ;;  %413 = vmatpush.msra.mxu0 %v371_v0  ;;  %v368_v3 = vld [vmem:[%s3921_s1] sm:$0xff]  ;;  %s2669_s23 = sshll.u32 %s3932_s14, 6  ;;  %v445_v5 = vld [vmem:[%s3922_s2 + $0x18] sm:$0xff]  ;;  %v444_v7 = vld [vmem:[%s3922_s2 + $0x10] sm:$0xff]  ;;  %vm638_vm2 = vcmask 523264  }
   0xd   : > { %s2931_s26 = scalar_lea.vmem %s3920_s0, %s2669_s23  ;;  %v443_v8 = vld [vmem:[%s3922_s2 + $0x8] sm:$0xff]  ;;  %v442_v9 = vld [vmem:[%s3922_s2] sm:$0xff]  ;;  %v494_v44 = vld [vmem:[%s3923_s3 + $0x18] sm:$0xff]  ;;  %s3878_s16 = scalar_lea.vmem %s3930_s10, %s2669_s23 }
   0xe   : > { %2672 = vmatpush.msra.mxu1 %v370_v1  ;;  %414 = vmatpush.msra.mxu0 %v370_v1  ;;  %v2934_v4 = vld [vmem:[%s2931_s26 + $0x38] sm:$0xff]  ;;  %v2940_v6 = vld [vmem:[%s2931_s26] sm:$0xff]  ;;  %v2956_v10 = vld [vmem:[%s2931_s26 + $0x8] sm:$0xff] }
   0xf   : > { %v2963_v11 = vld [vmem:[%s2931_s26 + $0x10] sm:$0xff]  ;;  %v2970_v12 = vld [vmem:[%s2931_s26 + $0x18] sm:$0xff]  ;;  %v2977_v13 = vld [vmem:[%s2931_s26 + $0x20] sm:$0xff]  ;;  %511 = vmatpush.msra.mxu2 %v494_v44 }
  0x10   : > { %2673 = vmatpush.msra.mxu1 %v369_v2  ;;  %415 = vmatpush.msra.mxu0 %v369_v2  ;;  %v2984_v14 = vld [vmem:[%s2931_s26 + $0x28] sm:$0xff]  ;;  %v2991_v15 = vld [vmem:[%s2931_s26 + $0x30] sm:$0xff]  ;;  %v2692_v24 = vld [vmem:[%s3925_s5] ss:$0 sm:$0xff] }
  0x11   : > { %v2691_v36 = vld [vmem:[%s3924_s4] ss:$0 sm:$0xff]  ;;  %v493_v45 = vld [vmem:[%s3923_s3 + $0x10] sm:$0xff]  ;;  %v492_v46 = vld [vmem:[%s3923_s3 + $0x8] sm:$0xff] }
  0x12   : > { %2674 = vmatpush.msra.mxu1 %v368_v3  ;;  %416 = vmatpush.msra.mxu0 %v368_v3  ;;  %v491_v48 = vld [vmem:[%s3923_s3] sm:$0xff]  ;;  %v2435_v54 = vld [vmem:[%s3922_s2 + $0x38] sm:$0xff]  ;;  %v2434_v55 = vld [vmem:[%s3922_s2 + $0x30] sm:$0xff] }
  0x13   : > { %2378 = vmatmul.msk.f32.vlgmr.msra.gmra.mxu1 %vm376_vm0, %v2934_v4  ;;  %2371 = vmatmul.msk.f32.vlgmr.msra.gmra.mxu0 %vm376_vm0, %v2940_v6  ;;  %v2433_v56 = vld [vmem:[%s3922_s2 + $0x28] sm:$0xff]  ;;  %v2432_v57 = vld [vmem:[%s3922_s2 + $0x20] sm:$0xff]  ;;  %v542_v62 = vld [vmem:[%s3927_s7 + $0x10] sm:$0xff] }
  0x14   : > { %462 = vmatpush.msrb.mxu1 %v445_v5  ;;  %512 = vmatpush.msra.mxu2 %v493_v45  ;;  %v540_v58 = vld [vmem:[%s3927_s7] sm:$0xff]  ;;  %v541_v0 = vld [vmem:[%s3927_s7 + $0x8] sm:$0xff] }
  0x16   : > { %463 = vmatpush.msrb.mxu1 %v444_v7  ;;  %513 = vmatpush.msra.mxu2 %v492_v46 }
  0x18   : > { %464 = vmatpush.msrb.mxu1 %v443_v8  ;;  %514 = vmatpush.msra.mxu2 %v491_v48  ;;  %v543_v8 = vld [vmem:[%s3927_s7 + $0x18] sm:$0xff] }
  0x19   : > { %2387 = vmatmul.msk.f32.vlgmr.msra.gmra.mxu2 %vm376_vm0, %v2940_v6 }
  0x1a   : > { %465 = vmatpush.msrb.mxu1 %v442_v9  ;;  %866 = vmatpush.msrb.mxu2 %v2435_v54 }
  0x1b   : > { %2379 = vmatmul.msk.f32.vlgmr.msrb.gmra.mxu1 %vm376_vm0, %v2940_v6  ;;  %2372 = vmatmul.msk.f32.gmra.mxu0 %vm376_vm0, %v2956_v10 }
  0x1c   : > { %867 = vmatpush.msrb.mxu2 %v2434_v55 }
  0x1e   : > { %868 = vmatpush.msrb.mxu2 %v2433_v56 }
  0x20   : > { %869 = vmatpush.msrb.mxu2 %v2432_v57 }
  0x21   : > { %2388 = vmatmul.msk.f32.gmra.mxu2 %vm376_vm0, %v2956_v10 }
  0x23   : > { %2380 = vmatmul.msk.f32.gmra.mxu1 %vm376_vm0, %v2956_v10  ;;  %2373 = vmatmul.msk.f32.gmra.mxu0 %vm376_vm0, %v2963_v11 }
  0x29   : > { %2389 = vmatmul.msk.f32.gmra.mxu2 %vm376_vm0, %v2963_v11 }
  0x2b   : > { %2381 = vmatmul.msk.f32.gmra.mxu1 %vm376_vm0, %v2963_v11  ;;  %2374 = vmatmul.msk.f32.gmra.mxu0 %vm376_vm0, %v2970_v12 }
  0x31   : > { %2390 = vmatmul.msk.f32.gmra.mxu2 %vm376_vm0, %v2970_v12 }
  0x33   : > { %2382 = vmatmul.msk.f32.gmra.mxu1 %vm376_vm0, %v2970_v12  ;;  %2375 = vmatmul.msk.f32.gmra.mxu0 %vm376_vm0, %v2977_v13 }
  0x39   : > { %2391 = vmatmul.msk.f32.gmra.mxu2 %vm376_vm0, %v2977_v13 }
  0x3b   : > { %2383 = vmatmul.msk.f32.gmra.mxu1 %vm376_vm0, %v2977_v13  ;;  %2376 = vmatmul.msk.f32.gmra.mxu0 %vm376_vm0, %v2984_v14 }
  0x41   : > { %2392 = vmatmul.msk.f32.gmra.mxu2 %vm376_vm0, %v2984_v14 }
  0x43   : > { %2384 = vmatmul.msk.f32.gmra.mxu1 %vm376_vm0, %v2984_v14  ;;  %2377 = vmatmul.msk.f32.gmra.mxu0 %vm376_vm0, %v2991_v15 }
  0x49   : > { %2393 = vmatmul.msk.f32.gmra.mxu2 %vm376_vm0, %v2991_v15 }
  0x4b   : > { %2385 = vmatmul.msk.f32.gmra.mxu1 %vm376_vm0, %v2991_v15 }
  0x51   : > { %2394 = vmatmul.msk.f32.gmra.mxu2 %vm376_vm0, %v2934_v4 }
  0x53   : > { %2386 = vmatmul.msk.f32.gmra.mxu1 %vm376_vm0, %v2934_v4 }
  0x59   : > { %2437 = vmatmul.msk.f32.vlgmr.msrb.gmra.mxu2 %vm376_vm0, %v2940_v6 }
  0x61   : > { %2438 = vmatmul.msk.f32.gmra.mxu2 %vm376_vm0, %v2956_v10 }
  0x69   : > { %2439 = vmatmul.msk.f32.gmra.mxu2 %vm376_vm0, %v2963_v11 }
  0x71   : > { %2440 = vmatmul.msk.f32.gmra.mxu2 %vm376_vm0, %v2970_v12 }
  0x79   : > { %2441 = vmatmul.msk.f32.gmra.mxu2 %vm376_vm0, %v2977_v13 }
  0x81   : > { %2442 = vmatmul.msk.f32.gmra.mxu2 %vm376_vm0, %v2984_v14 }
  0x89   : > { %2443 = vmatmul.msk.f32.gmra.mxu2 %vm376_vm0, %v2991_v15 }
  0x90   : > { %v3001_v16 = vpop.f32.mrf.mxu1  ;;  %v418_v25 = vpop.f32.mrf.mxu0 }
  0x91   : > { %v419_v40 = vadd.f32 %v2691_v36, %v418_v25  ;;  %v440_v53 = vadd.f32 %v2691_v36, %v3001_v16  ;;  %2444 = vmatmul.msk.f32.gmra.mxu2 %vm376_vm0, %v2934_v4 }
  0x98   : > { %v467_v17 = vpop.f32.mrf.mxu1  ;;  %v421_v30 = vpop.f32.mrf.mxu0 }
  0x99   : > { %v468_v37 = vadd.f32 %v2692_v24, %v467_v17  ;;  %v422_v43 = vadd.f32 %v2691_v36, %v421_v30 }
  0x9c   : > { %v516_v30 = vpop.f32.mrf.mxu2 }
  0xa0   : > { %v470_v18 = vpop.f32.mrf.mxu1  ;;  %v424_v33 = vpop.f32.mrf.mxu0 }
  0xa1   : > { %v471_v35 = vadd.f32 %v2692_v24, %v470_v18  ;;  %v425_v39 = vadd.f32 %v2691_v36, %v424_v33  ;;  %v544_v18 = vld [vmem:[%s3927_s7 + $0x20] sm:$0xff] }
  0xa8   : > { %v473_v19 = vpop.f32.mrf.mxu1  ;;  %v427_v38 = vpop.f32.mrf.mxu0 }
  0xa9   : > { %v474_v34 = vadd.f32 %v2692_v24, %v473_v19  ;;  %v428_v41 = vadd.f32 %v2691_v36, %v427_v38 }
  0xb0   : > { %v476_v20 = vpop.f32.mrf.mxu1  ;;  %v430_v42 = vpop.f32.mrf.mxu0 }
  0xb1   : > { %v477_v32 = vadd.f32 %v2692_v24, %v476_v20  ;;  %v431_v47 = vadd.f32 %v2691_v36, %v430_v42 }
  0xb8   : > { %v479_v21 = vpop.f32.mrf.mxu1  ;;  %v433_v49 = vpop.f32.mrf.mxu0 }
  0xb9   : > { %v480_v31 = vadd.f32 %v2692_v24, %v479_v21  ;;  %v434_v50 = vadd.f32 %v2691_v36, %v433_v49 }
  0xc0   : > { %v482_v22 = vpop.f32.mrf.mxu1  ;;  %v436_v51 = vpop.f32.mrf.mxu0 }
  0xc1   : > { %v483_v29 = vadd.f32 %v2692_v24, %v482_v22  ;;  %v437_v52 = vadd.f32 %v2691_v36, %v436_v51  ;;  %v545_v22 = vld [vmem:[%s3927_s7 + $0x28] sm:$0xff] }
  0xc8   : > { %v485_v23 = vpop.f32.mrf.mxu1 }
  0xc9   : > { %v486_v28 = vadd.f32 %v2692_v24, %v485_v23 }
  0xd0   : > { %v488_v26 = vpop.f32.mrf.mxu1 }
  0xd1   : > { %v489_v27 = vadd.f32 %v2692_v24, %v488_v26  ;;  %v546_v26 = vld [vmem:[%s3927_s7 + $0x30] sm:$0xff] }
  0xd3   : > { %2395 = vmatpush.xpose.msk.msrb.mxu0 %vm548_vm1, %v489_v27  ;;  %2675 = vmatpush.xpose.msk.msra.mxu3 %vm548_vm1, %v489_v27 }
  0xd7   : > { %2396 = vmatpush.xpose.msk.msrb.mxu0 %vm548_vm1, %v486_v28  ;;  %2676 = vmatpush.xpose.msk.msra.mxu3 %vm548_vm1, %v486_v28 }
  0xdb   : > { %2397 = vmatpush.xpose.msk.msrb.mxu0 %vm548_vm1, %v483_v29  ;;  %2677 = vmatpush.xpose.msk.msra.mxu3 %vm548_vm1, %v483_v29 }
  0xdf   : > { %2398 = vmatpush.xpose.msk.msrb.mxu0 %vm548_vm1, %v480_v31  ;;  %2678 = vmatpush.xpose.msk.msra.mxu3 %vm548_vm1, %v480_v31  ;;  %v547_v31 = vld [vmem:[%s3927_s7 + $0x38] sm:$0xff] }
  0xe3   : > { %2399 = vmatpush.xpose.msk.msrb.mxu0 %vm548_vm1, %v477_v32  ;;  %2679 = vmatpush.xpose.msk.msra.mxu3 %vm548_vm1, %v477_v32 }
  0xe7   : > { %2400 = vmatpush.xpose.msk.msrb.mxu0 %vm548_vm1, %v474_v34  ;;  %2680 = vmatpush.xpose.msk.msra.mxu3 %vm548_vm1, %v474_v34 }
  0xeb   : > { %2401 = vmatpush.xpose.msk.msrb.mxu0 %vm548_vm1, %v471_v35  ;;  %2681 = vmatpush.xpose.msk.msra.mxu3 %vm548_vm1, %v471_v35  ;;  %v519_v35 = vpop.f32.mrf.mxu2 }
  0xef   : > { %2402 = vmatpush.xpose.msk.msrb.mxu0 %vm548_vm1, %v468_v37  ;;  %2682 = vmatpush.xpose.msk.msra.mxu3 %vm548_vm1, %v468_v37 }
  0xf2   : > { %2403 = vmatmul.msk.f32.vlgmr.msrb.gmra.mxu0 %vm548_vm1, %v419_v40  ;;  %2405 = vmatmul.msk.f32.vlgmr.msra.gmra.mxu3 %vm548_vm1, %v425_v39 }
  0xf3   : > { %v522_v36 = vpop.f32.mrf.mxu2 }
  0xfa   : > { %2404 = vmatmul.msk.f32.gmra.mxu0 %vm548_vm1, %v422_v43  ;;  %2406 = vmatmul.msk.f32.gmra.mxu3 %vm548_vm1, %v428_v41  ;;  %v2693_v41 = vld [vmem:[%s3926_s6] ss:$0 sm:$0xff] }
  0xfb   : > { %v525_v37 = vpop.f32.mrf.mxu2  ;;  %v523_v49 = vadd.f32 %v2693_v41, %v522_v36 }
 0x102   : > { %2407 = vmatmul.msk.f32.gmra.mxu3 %vm548_vm1, %v431_v47  ;;  %v526_v47 = vadd.f32 %v2693_v41, %v525_v37 }
 0x103   : > { %v528_v38 = vpop.f32.mrf.mxu2 }
 0x104   : > { %v529_v46 = vadd.f32 %v2693_v41, %v528_v38 }
 0x10a   : > { %2408 = vmatmul.msk.f32.gmra.mxu3 %vm548_vm1, %v434_v50  ;;  %v520_v50 = vadd.f32 %v2693_v41, %v519_v35 }
 0x10b   : > { %v531_v39 = vpop.f32.mrf.mxu2 }
 0x10c   : > { %v532_v45 = vadd.f32 %v2693_v41, %v531_v39 }
 0x112   : > { %2409 = vmatmul.msk.f32.gmra.mxu3 %vm548_vm1, %v437_v52  ;;  %v517_v52 = vadd.f32 %v2693_v41, %v516_v30 }
 0x113   : > { %v534_v40 = vpop.f32.mrf.mxu2 }
 0x114   : > { %v535_v43 = vadd.f32 %v2693_v41, %v534_v40 }
 0x11a   : > { %2410 = vmatmul.msk.f32.gmra.mxu3 %vm548_vm1, %v440_v53 }
 0x11b   : > { %v537_v42 = vpop.f32.mrf.mxu2 }
 0x11c   : > { %v538_v44 = vadd.f32 %v2693_v41, %v537_v42 }
 0x11e   : > { %759 = vmatpush.msra.mxu0 %v538_v44 }
 0x120   : > { %760 = vmatpush.msra.mxu0 %v535_v43 }
 0x122   : > { %761 = vmatpush.msra.mxu0 %v532_v45 }
 0x123   : > { %v3149_v48 = vpop.f32.mrf.mxu2 }
 0x124   : > { %762 = vmatpush.msra.mxu0 %v529_v46 }
 0x126   : > { %763 = vmatpush.msra.mxu0 %v526_v47 }
 0x128   : > { %764 = vmatpush.msra.mxu0 %v523_v49 }
 0x12a   : > { %765 = vmatpush.msra.mxu0 %v520_v50 }
 0x12b   : > { %v3152_v55 = vpop.f32.mrf.mxu2 }
 0x12c   : > { %766 = vmatpush.msra.mxu0 %v517_v52 }
 0x16f   : > { %v614_v59 = vpop.f32.mrf.mxu0 }
 0x170   : > { %v3083_v60 = vadd.f32 %v614_v59, %v540_v58 }
 0x172   : > { %v639_v61 = vsel %vm638_vm2, %v3083_v60, -inf }
 0x173   : > { %640 = vmax.xlane.f32.xlu0 %v639_v61 }
 0x175   : > { %v620_v63 = vpop.f32.mrf.mxu3 }
 0x176   : > { %v3093_v1 = vadd.f32 %v620_v63, %v542_v62 }
 0x177   : > { %v617_v2 = vpop.f32.mrf.mxu0 }
 0x178   : > { %v3097_v3 = vadd.f32 %v617_v2, %v541_v0  ;;  %v645_v5 = vsel %vm638_vm2, %v3093_v1, -inf  ;;  %v3163_v2 = vpop.f32.mrf.mxu2 }
 0x179   : > { %646 = vmax.xlane.f32.xlu1 %v645_v5 }
 0x17a   : > { %v642_v7 = vsel %vm638_vm2, %v3097_v3, -inf }
 0x17b   : > { %643 = vmax.xlane.f32.xlu0 %v642_v7 }
 0x17d   : > { %v623_v9 = vpop.f32.mrf.mxu3 }
 0x17e   : > { %v3106_v16 = vadd.f32 %v623_v9, %v543_v8  ;;  %v2421_v9 = vld [vmem:[%s3921_s1 + $0x30] sm:$0xff] }
 0x180   : > { %v648_v17 = vsel %vm638_vm2, %v3106_v16, -inf }
 0x181   : > { %649 = vmax.xlane.f32.xlu1 %v648_v17 }
 0x185   : > { %v626_v19 = vpop.f32.mrf.mxu3 }
 0x186   : > { %v3115_v20 = vadd.f32 %v626_v19, %v544_v18  ;;  %v880_v19 = vpop.f32.mrf.mxu2 }
 0x188   : > { %v651_v21 = vsel %vm638_vm2, %v3115_v20, -inf }
 0x189   : > { %652 = vmax.xlane.f32.xlu2 %v651_v21 }
 0x18d   : > { %v629_v23 = vpop.f32.mrf.mxu3 }
 0x18e   : > { %v3124_v24 = vadd.f32 %v629_v23, %v545_v22 }
 0x190   : > { %v654_v25 = vsel %vm638_vm2, %v3124_v24, -inf }
 0x191   : > { %655 = vmax.xlane.f32.xlu2 %v654_v25 }
 0x195   : > { %v632_v27 = vpop.f32.mrf.mxu3 }
 0x196   : > { %v3133_v28 = vadd.f32 %v632_v27, %v546_v26  ;;  %v2420_v26 = vld [vmem:[%s3921_s1 + $0x28] sm:$0xff]  ;;  %v2419_v27 = vld [vmem:[%s3921_s1 + $0x20] sm:$0xff] }
 0x198   : > { %v657_v29 = vsel %vm638_vm2, %v3133_v28, -inf }
 0x199   : > { %658 = vmax.xlane.f32.xlu0 %v657_v29  ;;  %v883_v29 = vpop.f32.mrf.mxu2 }
 0x19d   : > { %v635_v32 = vpop.f32.mrf.mxu3 }
 0x19e   : > { %v3142_v33 = vadd.f32 %v635_v32, %v547_v31 }
 0x1a0   : > { %v660_v34 = vsel %vm638_vm2, %v3142_v33, -inf }
 0x1a1   : > { %661 = vmax.xlane.f32.xlu2 %v660_v34  ;;  %v886_v35 = vpop.f32.mrf.mxu2 }
 0x1a9   : > { %v889_v40 = vpop.f32.mrf.mxu2 }
 0x1b1   : > { %v892_v46 = vpop.f32.mrf.mxu2 }
 0x1e6   : > { %v641_v51 = vpop.xlane.xlu0 %640 }
 0x1e7   : > { %v663_v53 = vsub.f32 %v3083_v60, %v641_v51  ;;  %v2422_v60 = vld [vmem:[%s3921_s1 + $0x38] sm:$0xff] }
 0x1e8   : > { %815 = vmatpush.msra.mxu1 %v2422_v60 }
 0x1e9   : > { %v671_v54 = vmul.f32 1.442695, %v663_v53 }
 0x1ea   : > { %816 = vmatpush.msra.mxu1 %v2421_v9 }
 0x1eb   : > { %2704 = vpow2.f32 %v671_v54 }
 0x1ec   : > { %v647_v56 = vpop.xlane.xlu1 %646  ;;  %817 = vmatpush.msra.mxu1 %v2420_v26 }
 0x1ed   : > { %v665_v57 = vsub.f32 %v3093_v1, %v647_v56 }
 0x1ee   : > { %v644_v58 = vpop.xlane.xlu0 %643  ;;  %818 = vmatpush.msra.mxu1 %v2419_v27 }
 0x1ef   : > { %v675_v59 = vmul.f32 1.442695, %v665_v57  ;;  %v664_v61 = vsub.f32 %v3097_v3, %v644_v58  ;;  %2424 = vmatmul.msk.f32.vlgmr.msra.gmra.mxu1 %vm376_vm0, %v2940_v6 }
 0x1f1   : > { %v3156_v62 = vpop.eup %2704  ;;  %2706 = vpow2.f32 %v675_v59  ;;  %v673_v63 = vmul.f32 1.442695, %v664_v61 }
 0x1f2   : > { %v687_v0 = vsel %vm638_vm2, %v3156_v62, 0.0 }
 0x1f3   : > { %2708 = vpow2.f32 %v673_v63  ;;  %688 = vadd.xlane.f32.xlu1 %v687_v0 }
 0x1f4   : > { %v650_v1 = vpop.xlane.xlu1 %649 }
 0x1f5   : > { %v666_v5 = vsub.f32 %v3106_v16, %v650_v1 }
 0x1f7   : > { %v3166_v3 = vpop.eup %2706  ;;  %v677_v7 = vmul.f32 1.442695, %v666_v5  ;;  %2425 = vmatmul.msk.f32.gmra.mxu1 %vm376_vm0, %v2956_v10 }
 0x1f8   : > { %v693_v17 = vsel %vm638_vm2, %v3166_v3, 0.0 }
 0x1f9   : > { %v3168_v8 = vpop.eup %2708  ;;  %2710 = vpow2.f32 %v677_v7 }
 0x1fa   : > { %v690_v18 = vsel %vm638_vm2, %v3168_v8, 0.0 }
 0x1fb   : > { %694 = vadd.xlane.f32.xlu1 %v693_v17  ;;  %691 = vadd.xlane.f32.xlu0 %v690_v18  ;;  %v2445_v18 = vld [vmem:[%s3923_s3 + $0x20] sm:$0xff] }
 0x1fc   : > { %v653_v16 = vpop.xlane.xlu2 %652 }
 0x1fd   : > { %v667_v21 = vsub.f32 %v3115_v20, %v653_v16 }
 0x1ff   : > { %v3178_v22 = vpop.eup %2710  ;;  %v679_v23 = vmul.f32 1.442695, %v667_v21  ;;  %2426 = vmatmul.msk.f32.gmra.mxu1 %vm376_vm0, %v2963_v11 }
 0x200   : > { %v696_v25 = vsel %vm638_vm2, %v3178_v22, 0.0 }
 0x201   : > { %2712 = vpow2.f32 %v679_v23  ;;  %697 = vadd.xlane.f32.xlu2 %v696_v25 }
 0x204   : > { %v656_v30 = vpop.xlane.xlu2 %655 }
 0x205   : > { %v668_v20 = vsub.f32 %v3124_v24, %v656_v30 }
 0x207   : > { %v3191_v31 = vpop.eup %2712  ;;  %v681_v32 = vmul.f32 1.442695, %v668_v20  ;;  %2427 = vmatmul.msk.f32.gmra.mxu1 %vm376_vm0, %v2970_v12 }
 0x208   : > { %v699_v34 = vsel %vm638_vm2, %v3191_v31, 0.0 }
 0x209   : > { %2714 = vpow2.f32 %v681_v32  ;;  %700 = vadd.xlane.f32.xlu0 %v699_v34 }
 0x20c   : > { %v659_v36 = vpop.xlane.xlu0 %658 }
 0x20d   : > { %v669_v37 = vsub.f32 %v3133_v28, %v659_v36  ;;  %v2694_v28 = vld [vmem:[%s3925_s5 + $0x1] ss:$0 sm:$0xff] }
 0x20e   : > { %v893_v47 = vadd.f32 %v2694_v28, %v892_v46  ;;  %v890_v49 = vadd.f32 %v2694_v28, %v889_v40  ;;  %v887_v51 = vadd.f32 %v2694_v28, %v886_v35  ;;  %v884_v52 = vadd.f32 %v2694_v28, %v883_v29 }
 0x20f   : > { %v3198_v38 = vpop.eup %2714  ;;  %v683_v24 = vmul.f32 1.442695, %v669_v37  ;;  %2428 = vmatmul.msk.f32.gmra.mxu1 %vm376_vm0, %v2977_v13  ;;  %v881_v53 = vadd.f32 %v2694_v28, %v880_v19  ;;  %v878_v54 = vadd.f32 %v2694_v28, %v3163_v2  ;;  %v875_v56 = vadd.f32 %v2694_v28, %v3152_v55 }
 0x210   : > { %v702_v39 = vsel %vm638_vm2, %v3198_v38, 0.0  ;;  %2466 = vmatpush.xpose.msk.msrb.mxu0 %vm548_vm1, %v893_v47  ;;  %v872_v57 = vadd.f32 %v2694_v28, %v3149_v48 }
 0x211   : > { %2716 = vpow2.f32 %v683_v24  ;;  %703 = vadd.xlane.f32.xlu1 %v702_v39 }
 0x214   : > { %v662_v41 = vpop.xlane.xlu2 %661  ;;  %2467 = vmatpush.xpose.msk.msrb.mxu0 %vm548_vm1, %v890_v49 }
 0x215   : > { %v670_v42 = vsub.f32 %v3142_v33, %v662_v41 }
 0x217   : > { %v3205_v43 = vpop.eup %2716  ;;  %v685_v44 = vmul.f32 1.442695, %v670_v42  ;;  %2429 = vmatmul.msk.f32.gmra.mxu1 %vm376_vm0, %v2984_v14 }
 0x218   : > { %v705_v45 = vsel %vm638_vm2, %v3205_v43, 0.0  ;;  %2468 = vmatpush.xpose.msk.msrb.mxu0 %vm548_vm1, %v887_v51  ;;  %v2458_v51 = vld [vmem:[%s3927_s7 + $0x40] sm:$0xff] }
 0x219   : > { %2718 = vpow2.f32 %v685_v44  ;;  %706 = vadd.xlane.f32.xlu2 %v705_v45 }
 0x21c   : > { %2469 = vmatpush.xpose.msk.msrb.mxu0 %vm548_vm1, %v884_v52 }
 0x21f   : > { %v3215_v33 = vpop.eup %2718  ;;  %2430 = vmatmul.msk.f32.gmra.mxu1 %vm376_vm0, %v2991_v15 }
 0x220   : > { %v708_v50 = vsel %vm638_vm2, %v3215_v33, 0.0  ;;  %2470 = vmatpush.xpose.msk.msrb.mxu0 %vm548_vm1, %v881_v53 }
 0x221   : > { %709 = vadd.xlane.f32.xlu0 %v708_v50 }
 0x224   : > { %2471 = vmatpush.xpose.msk.msrb.mxu0 %vm548_vm1, %v878_v54 }
 0x227   : > { %2431 = vmatmul.msk.f32.gmra.mxu1 %vm376_vm0, %v2934_v4 }
 0x228   : > { %2472 = vmatpush.xpose.msk.msrb.mxu0 %vm548_vm1, %v875_v56 }
 0x22c   : > { %2473 = vmatpush.xpose.msk.msrb.mxu0 %vm548_vm1, %v872_v57  ;;  %v2459_v57 = vld [vmem:[%s3927_s7 + $0x48] sm:$0xff] }
 0x266   : > { %v689_v58 = vpop.xlane.xlu1 %688 }
 0x267   : > { %2720 = vrcp.f32 %v689_v58 }
 0x26c   : > { %v820_v27 = vpop.f32.mrf.mxu1 }
 0x26d   : > { %v2721_v59 = vpop.eup %2720 }
 0x26e   : > { %v719_v61 = vmul.f32 %v2721_v59, %v3156_v62  ;;  %v692_v55 = vpop.xlane.xlu0 %691  ;;  %v695_v48 = vpop.xlane.xlu1 %694  ;;  %v2448_v62 = vld [vmem:[%s3923_s3 + $0x38] sm:$0xff] }
 0x26f   : > { %2722 = vrcp.f32 %v692_v55  ;;  %917 = vmatpush.msrb.mxu3 %v2448_v62 }
 0x270   : > { %2411 = vmatmul.msk.f32.vlgmr.msra.gmra.mxu0 %vm638_vm2, %v719_v61  ;;  %2724 = vrcp.f32 %v695_v48  ;;  %v2460_v48 = vld [vmem:[%s3927_s7 + $0x50] sm:$0xff] }
 0x274   : > { %v698_v0 = vpop.xlane.xlu2 %697  ;;  %v823_v30 = vpop.f32.mrf.mxu1 }
 0x275   : > { %v2723_v63 = vpop.eup %2722  ;;  %2726 = vrcp.f32 %v698_v0 }
 0x276   : > { %v720_v60 = vmul.f32 %v2723_v63, %v3168_v8  ;;  %v2725_v2 = vpop.eup %2724  ;;  %v2447_v8 = vld [vmem:[%s3923_s3 + $0x30] sm:$0xff] }
 0x277   : > { %v721_v1 = vmul.f32 %v2725_v2, %v3166_v3  ;;  %v2446_v3 = vld [vmem:[%s3923_s3 + $0x28] sm:$0xff]  ;;  %918 = vmatpush.msrb.mxu3 %v2447_v8 }
 0x278   : > { %2412 = vmatmul.msk.f32.gmra.mxu0 %vm638_vm2, %v720_v60 }
 0x279   : > { %919 = vmatpush.msrb.mxu3 %v2446_v3 }
 0x27b   : > { %v2727_v7 = vpop.eup %2726  ;;  %920 = vmatpush.msrb.mxu3 %v2445_v18  ;;  %v2462_v18 = vld [vmem:[%s3927_s7 + $0x60] sm:$0xff] }
 0x27c   : > { %v701_v5 = vpop.xlane.xlu0 %700  ;;  %v722_v9 = vmul.f32 %v2727_v7, %v3178_v22  ;;  %2450 = vmatmul.msk.f32.vlgmr.msrb.gmra.mxu3 %vm376_vm0, %v2940_v6 }
 0x27d   : > { %2728 = vrcp.f32 %v701_v5  ;;  %v2696_v5 = vld [vmem:[%s3926_s6 + $0x1] ss:$0 sm:$0xff] }
 0x280   : > { %2413 = vmatmul.msk.f32.gmra.mxu0 %vm638_vm2, %v721_v1  ;;  %v2461_v1 = vld [vmem:[%s3927_s7 + $0x58] sm:$0xff] }
 0x283   : > { %v2729_v19 = vpop.eup %2728 }
 0x284   : > { %v704_v17 = vpop.xlane.xlu1 %703  ;;  %v723_v16 = vmul.f32 %v2729_v19, %v3191_v31  ;;  %2451 = vmatmul.msk.f32.gmra.mxu3 %vm376_vm0, %v2956_v10  ;;  %v2695_v10 = vld [vmem:[%s3924_s4 + $0x1] ss:$0 sm:$0xff] }
 0x285   : > { %2730 = vrcp.f32 %v704_v17  ;;  %v821_v31 = vadd.f32 %v2695_v10, %v820_v27  ;;  %v824_v32 = vadd.f32 %v2695_v10, %v823_v30  ;;  %v2463_v27 = vld [vmem:[%s3927_s7 + $0x68] sm:$0xff] }
 0x288   : > { %2414 = vmatmul.msk.f32.gmra.mxu0 %vm638_vm2, %v722_v9 }
 0x28b   : > { %v2731_v22 = vpop.eup %2730 }
 0x28c   : > { %v707_v21 = vpop.xlane.xlu2 %706  ;;  %v724_v23 = vmul.f32 %v2731_v22, %v3198_v38  ;;  %2452 = vmatmul.msk.f32.gmra.mxu3 %vm376_vm0, %v2963_v11  ;;  %v826_v11 = vpop.f32.mrf.mxu1 }
 0x28d   : > { %2732 = vrcp.f32 %v707_v21  ;;  %v827_v34 = vadd.f32 %v2695_v10, %v826_v11 }
 0x290   : > { %2415 = vmatmul.msk.f32.gmra.mxu0 %vm638_vm2, %v723_v16 }
 0x293   : > { %v2733_v26 = vpop.eup %2732 }
 0x294   : > { %v710_v25 = vpop.xlane.xlu0 %709  ;;  %v725_v29 = vmul.f32 %v2733_v26, %v3205_v43  ;;  %2453 = vmatmul.msk.f32.gmra.mxu3 %vm376_vm0, %v2970_v12  ;;  %v829_v12 = vpop.f32.mrf.mxu1 }
 0x295   : > { %2734 = vrcp.f32 %v710_v25  ;;  %v830_v36 = vadd.f32 %v2695_v10, %v829_v12 }
 0x298   : > { %2416 = vmatmul.msk.f32.gmra.mxu0 %vm638_vm2, %v724_v23 }
 0x29b   : > { %v2735_v6 = vpop.eup %2734 }
 0x29c   : > { %v726_v20 = vmul.f32 %v2735_v6, %v3215_v33  ;;  %2454 = vmatmul.msk.f32.gmra.mxu3 %vm376_vm0, %v2977_v13  ;;  %v832_v35 = vpop.f32.mrf.mxu1 }
 0x29d   : > { %v833_v13 = vadd.f32 %v2695_v10, %v832_v35 }
 0x2a0   : > { %2417 = vmatmul.msk.f32.gmra.mxu0 %vm638_vm2, %v725_v29 }
 0x2a4   : > { %2455 = vmatmul.msk.f32.gmra.mxu3 %vm376_vm0, %v2984_v14  ;;  %v792_v14 = vld [vmem:[%s3928_s8] sm:$0xff]  ;;  %v835_v37 = vpop.f32.mrf.mxu1 }
 0x2a5   : > { %1303 = vmatpush.msra.mxu3 %v792_v14  ;;  %v836_v38 = vadd.f32 %v2695_v10, %v835_v37 }
 0x2a8   : > { %2418 = vmatmul.msk.f32.gmra.mxu0 %vm638_vm2, %v726_v20 }
 0x2ac   : > { %2456 = vmatmul.msk.f32.gmra.mxu3 %vm376_vm0, %v2991_v15  ;;  %v838_v15 = vpop.f32.mrf.mxu1 }
 0x2ad   : > { %v839_v24 = vadd.f32 %v2695_v10, %v838_v15 }
 0x2b0   : > { %2474 = vmatmul.msk.f32.vlgmr.msrb.gmra.mxu0 %vm548_vm1, %v821_v31  ;;  %v2464_v31 = vld [vmem:[%s3927_s7 + $0x70] sm:$0xff] }
 0x2b4   : > { %2457 = vmatmul.msk.f32.gmra.mxu3 %vm376_vm0, %v2934_v4  ;;  %v841_v39 = vpop.f32.mrf.mxu1 }
 0x2b5   : > { %v842_v4 = vadd.f32 %v2695_v10, %v841_v39 }
 0x2b8   : > { %2475 = vmatmul.msk.f32.gmra.mxu0 %vm548_vm1, %v824_v32 }
 0x2c0   : > { %2476 = vmatmul.msk.f32.gmra.mxu0 %vm548_vm1, %v827_v34  ;;  %v2465_v34 = vld [vmem:[%s3927_s7 + $0x78] sm:$0xff] }
 0x2c8   : > { %2477 = vmatmul.msk.f32.gmra.mxu0 %vm548_vm1, %v830_v36 }
 0x2d0   : > { %2478 = vmatmul.msk.f32.gmra.mxu0 %vm548_vm1, %v833_v13 }
 0x2d8   : > { %2479 = vmatmul.msk.f32.gmra.mxu0 %vm548_vm1, %v836_v38 }
 0x2e0   : > { %2480 = vmatmul.msk.f32.gmra.mxu0 %vm548_vm1, %v839_v24 }
 0x2e8   : > { %2481 = vmatmul.msk.f32.gmra.mxu0 %vm548_vm1, %v842_v4 }
 0x2ed   : > { %v768_v40 = vpop.f32.mrf.mxu0 }
 0x2ee   : > { %2499 = vmatmul.msk.f32.vlgmr.msra.gmra.mxu3 %vm548_vm1, %v768_v40 }
 0x2f5   : > { %v771_v41 = vpop.f32.mrf.mxu0 }
 0x2f6   : > { %2500 = vmatmul.msk.f32.gmra.mxu3 %vm548_vm1, %v771_v41 }
 0x2fd   : > { %v774_v42 = vpop.f32.mrf.mxu0 }
 0x2fe   : > { %2501 = vmatmul.msk.f32.gmra.mxu3 %vm548_vm1, %v774_v42 }
 0x2ff   : > { %v922_v44 = vpop.f32.mrf.mxu3 }
 0x300   : > { %v923_v30 = vadd.f32 %v2696_v5, %v922_v44 }
 0x305   : > { %v777_v43 = vpop.f32.mrf.mxu0 }
 0x306   : > { %2502 = vmatmul.msk.f32.gmra.mxu3 %vm548_vm1, %v777_v43 }
 0x307   : > { %v925_v46 = vpop.f32.mrf.mxu3 }
 0x308   : > { %v926_v29 = vadd.f32 %v2696_v5, %v925_v46 }
 0x30d   : > { %v780_v28 = vpop.f32.mrf.mxu0 }
 0x30e   : > { %2503 = vmatmul.msk.f32.gmra.mxu3 %vm548_vm1, %v780_v28 }
 0x30f   : > { %v928_v49 = vpop.f32.mrf.mxu3 }
 0x310   : > { %v929_v26 = vadd.f32 %v2696_v5, %v928_v49 }
 0x315   : > { %v783_v45 = vpop.f32.mrf.mxu0 }
 0x316   : > { %2504 = vmatmul.msk.f32.gmra.mxu3 %vm548_vm1, %v783_v45 }
 0x317   : > { %v931_v50 = vpop.f32.mrf.mxu3 }
 0x318   : > { %v932_v23 = vadd.f32 %v2696_v5, %v931_v50 }
 0x31d   : > { %v786_v47 = vpop.f32.mrf.mxu0 }
 0x31e   : > { %2505 = vmatmul.msk.f32.gmra.mxu3 %vm548_vm1, %v786_v47 }
 0x31f   : > { %v934_v56 = vpop.f32.mrf.mxu3 }
 0x320   : > { %v935_v22 = vadd.f32 %v2696_v5, %v934_v56 }
 0x325   : > { %v789_v33 = vpop.f32.mrf.mxu0 }
 0x326   : > { %2506 = vmatmul.msk.f32.gmra.mxu3 %vm548_vm1, %v789_v33 }
 0x327   : > { %v937_v55 = vpop.f32.mrf.mxu3 }
 0x328   : > { %v938_v19 = vadd.f32 %v2696_v5, %v937_v55 }
 0x32d   : > { %v1020_v52 = vpop.f32.mrf.mxu0 }
 0x32e   : > { %v1021_v53 = vadd.f32 %v2458_v51, %v1020_v52 }
 0x32f   : > { %v940_v2 = vpop.f32.mrf.mxu3 }
 0x330   : > { %v1044_v54 = vsel %vm638_vm2, %v1021_v53, -inf  ;;  %v941_v3 = vadd.f32 %v2696_v5, %v940_v2 }
 0x331   : > { %1045 = vmax.xlane.f32.xlu1 %v1044_v54 }
 0x335   : > { %v1023_v58 = vpop.f32.mrf.mxu0 }
 0x336   : > { %v1024_v59 = vadd.f32 %v2459_v57, %v1023_v58 }
 0x337   : > { %v943_v8 = vpop.f32.mrf.mxu3 }
 0x338   : > { %v1047_v61 = vsel %vm638_vm2, %v1024_v59, -inf  ;;  %v944_v17 = vadd.f32 %v2696_v5, %v943_v8 }
 0x339   : > { %1048 = vmax.xlane.f32.xlu2 %v1047_v61 }
 0x33a   : > { %1164 = vmatpush.msrb.mxu1 %v944_v17 }
 0x33c   : > { %1165 = vmatpush.msrb.mxu1 %v941_v3 }
 0x33d   : > { %v1026_v63 = vpop.f32.mrf.mxu0 }
 0x33e   : > { %v1027_v60 = vadd.f32 %v2460_v48, %v1026_v63  ;;  %1166 = vmatpush.msrb.mxu1 %v938_v19 }
 0x340   : > { %v1050_v0 = vsel %vm638_vm2, %v1027_v60, -inf  ;;  %1167 = vmatpush.msrb.mxu1 %v935_v22 }
 0x341   : > { %1051 = vmax.xlane.f32.xlu0 %v1050_v0 }
 0x342   : > { %1168 = vmatpush.msrb.mxu1 %v932_v23 }
 0x344   : > { %1169 = vmatpush.msrb.mxu1 %v929_v26 }
 0x345   : > { %v1029_v62 = vpop.f32.mrf.mxu0 }
 0x346   : > { %v1030_v7 = vadd.f32 %v2461_v1, %v1029_v62  ;;  %1170 = vmatpush.msrb.mxu1 %v926_v29  ;;  %v2522_v29 = vld [vmem:[%s3922_s2 + $0x50] sm:$0xff] }
 0x348   : > { %v1053_v9 = vsel %vm638_vm2, %v1030_v7, -inf  ;;  %1171 = vmatpush.msrb.mxu1 %v923_v30 }
 0x349   : > { %1054 = vmax.xlane.f32.xlu1 %v1053_v9 }
 0x34d   : > { %v1032_v16 = vpop.f32.mrf.mxu0 }
 0x34e   : > { %v1033_v21 = vadd.f32 %v2462_v18, %v1032_v16  ;;  %v2523_v16 = vld [vmem:[%s3922_s2 + $0x58] sm:$0xff] }
 0x34f   : > { %1402 = vmatpush.msra.mxu1 %v2523_v16 }
 0x350   : > { %v1056_v25 = vsel %vm638_vm2, %v1033_v21, -inf }
 0x351   : > { %1057 = vmax.xlane.f32.xlu2 %v1056_v25  ;;  %1403 = vmatpush.msra.mxu1 %v2522_v29 }
 0x355   : > { %v1035_v6 = vpop.f32.mrf.mxu0 }
 0x356   : > { %v1036_v20 = vadd.f32 %v2463_v27, %v1035_v6 }
 0x358   : > { %v1059_v10 = vsel %vm638_vm2, %v1036_v20, -inf }
 0x359   : > { %1060 = vmax.xlane.f32.xlu0 %v1059_v10  ;;  %v2521_v10 = vld [vmem:[%s3922_s2 + $0x48] sm:$0xff] }
 0x35a   : > { %1404 = vmatpush.msra.mxu1 %v2521_v10 }
 0x35d   : > { %v1038_v11 = vpop.f32.mrf.mxu0 }
 0x35e   : > { %v1039_v32 = vadd.f32 %v2464_v31, %v1038_v11  ;;  %v2520_v31 = vld [vmem:[%s3922_s2 + $0x40] sm:$0xff] }
 0x35f   : > { %1405 = vmatpush.msra.mxu1 %v2520_v31  ;;  %v2533_v31 = vld [vmem:[%s3923_s3 + $0x40] sm:$0xff] }
 0x360   : > { %v1062_v12 = vsel %vm638_vm2, %v1039_v32, -inf }
 0x361   : > { %1063 = vmax.xlane.f32.xlu1 %v1062_v12 }
 0x365   : > { %v1041_v35 = vpop.f32.mrf.mxu0 }
 0x366   : > { %v1042_v36 = vadd.f32 %v2465_v34, %v1041_v35 }
 0x368   : > { %v1065_v13 = vsel %vm638_vm2, %v1042_v36, -inf }
 0x369   : > { %1066 = vmax.xlane.f32.xlu0 %v1065_v13 }
 0x3a4   : > { %v1046_v14 = vpop.xlane.xlu1 %1045 }
 0x3a5   : > { %v1068_v37 = vsub.f32 %v1021_v53, %v1046_v14 }
 0x3a7   : > { %v1076_v38 = vmul.f32 1.442695, %v1068_v37 }
 0x3a9   : > { %2736 = vpow2.f32 %v1076_v38 }
 0x3ac   : > { %v1049_v15 = vpop.xlane.xlu2 %1048 }
 0x3ad   : > { %v1069_v24 = vsub.f32 %v1024_v59, %v1049_v15 }
 0x3af   : > { %v2737_v39 = vpop.eup %2736  ;;  %v1078_v4 = vmul.f32 1.442695, %v1069_v24  ;;  %v3367_v24 = vld [vmem:[%s2931_s26] sm:$0xff] }
 0x3b0   : > { %v1092_v40 = vsel %vm638_vm2, %v2737_v39, 0.0 }
 0x3b1   : > { %2738 = vpow2.f32 %v1078_v4  ;;  %1093 = vadd.xlane.f32.xlu2 %v1092_v40  ;;  %v3377_v4 = vld [vmem:[%s2931_s26 + $0x10] sm:$0xff]  ;;  %v2510_v40 = vld [vmem:[%s3921_s1 + $0x58] sm:$0xff] }
 0x3b2   : > { %1351 = vmatpush.msra.mxu0 %v2510_v40 }
 0x3b4   : > { %v1052_v41 = vpop.xlane.xlu0 %1051 }
 0x3b5   : > { %v1070_v42 = vsub.f32 %v1027_v60, %v1052_v41  ;;  %v3385_v41 = vld [vmem:[%s2931_s26 + $0x18] sm:$0xff] }
 0x3b7   : > { %v2739_v43 = vpop.eup %2738  ;;  %v1080_v28 = vmul.f32 1.442695, %v1070_v42  ;;  %v2490_v42 = vld [vmem:[%s3928_s8 + $0x8] sm:$0xff] }
 0x3b8   : > { %v1095_v44 = vsel %vm638_vm2, %v2739_v43, 0.0  ;;  %1238 = vmatpush.msra.mxu2 %v2490_v42 }
 0x3b9   : > { %2740 = vpow2.f32 %v1080_v28  ;;  %1096 = vadd.xlane.f32.xlu1 %v1095_v44  ;;  %v2509_v28 = vld [vmem:[%s3921_s1 + $0x50] sm:$0xff]  ;;  %v3401_v44 = vld [vmem:[%s2931_s26 + $0x28] sm:$0xff] }
 0x3ba   : > { %1352 = vmatpush.msra.mxu0 %v2509_v28 }
 0x3bc   : > { %v1055_v45 = vpop.xlane.xlu1 %1054 }
 0x3bd   : > { %v1071_v46 = vsub.f32 %v1030_v7, %v1055_v45  ;;  %v2508_v45 = vld [vmem:[%s3921_s1 + $0x48] sm:$0xff] }
 0x3be   : > { %1353 = vmatpush.msra.mxu0 %v2508_v45 }
 0x3bf   : > { %v2741_v47 = vpop.eup %2740  ;;  %v1082_v49 = vmul.f32 1.442695, %v1071_v46  ;;  %v3409_v46 = vld [vmem:[%s2931_s26 + $0x30] sm:$0xff] }
 0x3c0   : > { %v1098_v33 = vsel %vm638_vm2, %v2741_v47, 0.0 }
 0x3c1   : > { %2742 = vpow2.f32 %v1082_v49  ;;  %1099 = vadd.xlane.f32.xlu2 %v1098_v33  ;;  %v3419_v49 = vld [vmem:[%s2931_s26 + $0x38] sm:$0xff] }
 0x3c4   : > { %v1058_v50 = vpop.xlane.xlu2 %1057 }
 0x3c5   : > { %v1072_v51 = vsub.f32 %v1033_v21, %v1058_v50 }
 0x3c7   : > { %v2743_v52 = vpop.eup %2742  ;;  %v1084_v53 = vmul.f32 1.442695, %v1072_v51 }
 0x3c8   : > { %v1101_v54 = vsel %vm638_vm2, %v2743_v52, 0.0 }
 0x3c9   : > { %2744 = vpow2.f32 %v1084_v53  ;;  %1102 = vadd.xlane.f32.xlu0 %v1101_v54 }
 0x3cc   : > { %v1061_v56 = vpop.xlane.xlu0 %1060 }
 0x3cd   : > { %v1073_v57 = vsub.f32 %v1036_v20, %v1061_v56 }
 0x3cf   : > { %v2745_v58 = vpop.eup %2744  ;;  %v1086_v59 = vmul.f32 1.442695, %v1073_v57 }
 0x3d0   : > { %v1104_v61 = vsel %vm638_vm2, %v2745_v58, 0.0 }
 0x3d1   : > { %2746 = vpow2.f32 %v1086_v59  ;;  %1105 = vadd.xlane.f32.xlu1 %v1104_v61 }
 0x3d4   : > { %v1064_v55 = vpop.xlane.xlu1 %1063 }
 0x3d5   : > { %v1074_v48 = vsub.f32 %v1039_v32, %v1064_v55 }
 0x3d7   : > { %v2747_v63 = vpop.eup %2746  ;;  %v1088_v60 = vmul.f32 1.442695, %v1074_v48 }
 0x3d8   : > { %v1107_v0 = vsel %vm638_vm2, %v2747_v63, 0.0 }
 0x3d9   : > { %2748 = vpow2.f32 %v1088_v60  ;;  %1108 = vadd.xlane.f32.xlu2 %v1107_v0  ;;  %v2697_v0 = vld [vmem:[%s3925_s5 + $0x2] ss:$0 sm:$0xff] }
 0x3dc   : > { %v1067_v2 = vpop.xlane.xlu0 %1066 }
 0x3dd   : > { %v1075_v1 = vsub.f32 %v1042_v36, %v1067_v2 }
 0x3df   : > { %v2749_v62 = vpop.eup %2748  ;;  %v1090_v5 = vmul.f32 1.442695, %v1075_v1 }
 0x3e0   : > { %v1110_v7 = vsel %vm638_vm2, %v2749_v62, 0.0 }
 0x3e1   : > { %2750 = vpow2.f32 %v1090_v5  ;;  %1111 = vadd.xlane.f32.xlu0 %v1110_v7 }
 0x3e7   : > { %v2751_v9 = vpop.eup %2750 }
 0x3e8   : > { %v1113_v8 = vsel %vm638_vm2, %v2751_v9, 0.0 }
 0x3e9   : > { %1114 = vadd.xlane.f32.xlu1 %v1113_v8 }
 0x424   : > { %v1094_v3 = vpop.xlane.xlu2 %1093 }
 0x425   : > { %2752 = vrcp.f32 %v1094_v3 }
 0x42b   : > { %v2753_v17 = vpop.eup %2752 }
 0x42c   : > { %v1124_v18 = vmul.f32 %v2753_v17, %v2737_v39  ;;  %v1097_v19 = vpop.xlane.xlu1 %1096  ;;  %v3372_v39 = vld [vmem:[%s2931_s26 + $0x8] sm:$0xff] }
 0x42d   : > { %2754 = vrcp.f32 %v1097_v19  ;;  %v2698_v19 = vld [vmem:[%s3924_s4 + $0x2] ss:$0 sm:$0xff] }
 0x42e   : > { %2482 = vmatmul.msk.f32.vlgmr.msrb.gmra.mxu1 %vm638_vm2, %v1124_v18 }
 0x433   : > { %v2755_v21 = vpop.eup %2754 }
 0x434   : > { %v1100_v22 = vpop.xlane.xlu2 %1099  ;;  %v1125_v23 = vmul.f32 %v2755_v21, %v2739_v43  ;;  %v3393_v43 = vld [vmem:[%s2931_s26 + $0x20] sm:$0xff] }
 0x435   : > { %2756 = vrcp.f32 %v1100_v22 }
 0x436   : > { %2483 = vmatmul.msk.f32.gmra.mxu1 %vm638_vm2, %v1125_v23 }
 0x43b   : > { %v2757_v25 = vpop.eup %2756 }
 0x43c   : > { %v1103_v26 = vpop.xlane.xlu0 %1102  ;;  %v1126_v27 = vmul.f32 %v2757_v25, %v2741_v47  ;;  %v2507_v47 = vld [vmem:[%s3921_s1 + $0x40] sm:$0xff] }
 0x43d   : > { %2758 = vrcp.f32 %v1103_v26  ;;  %1354 = vmatpush.msra.mxu0 %v2507_v47 }
 0x43e   : > { %2484 = vmatmul.msk.f32.gmra.mxu1 %vm638_vm2, %v1126_v27  ;;  %2512 = vmatmul.msk.f32.vlgmr.msra.gmra.mxu0 %vm376_vm0, %v3367_v24 }
 0x443   : > { %v2759_v6 = vpop.eup %2758 }
 0x444   : > { %v1106_v30 = vpop.xlane.xlu1 %1105  ;;  %v1127_v20 = vmul.f32 %v2759_v6, %v2743_v52  ;;  %v2536_v6 = vld [vmem:[%s3923_s3 + $0x58] sm:$0xff] }
 0x445   : > { %2760 = vrcp.f32 %v1106_v30  ;;  %v2535_v30 = vld [vmem:[%s3923_s3 + $0x50] sm:$0xff]  ;;  %1453 = vmatpush.msrb.mxu2 %v2536_v6 }
 0x446   : > { %2485 = vmatmul.msk.f32.gmra.mxu1 %vm638_vm2, %v1127_v20  ;;  %2513 = vmatmul.msk.f32.gmra.mxu0 %vm376_vm0, %v3372_v39  ;;  %v2534_v20 = vld [vmem:[%s3923_s3 + $0x48] sm:$0xff] }
 0x447   : > { %1454 = vmatpush.msrb.mxu2 %v2535_v30 }
 0x449   : > { %1455 = vmatpush.msrb.mxu2 %v2534_v20 }
 0x44b   : > { %v2761_v11 = vpop.eup %2760  ;;  %1456 = vmatpush.msrb.mxu2 %v2533_v31 }
 0x44c   : > { %v1109_v32 = vpop.xlane.xlu2 %1108  ;;  %v1128_v12 = vmul.f32 %v2761_v11, %v2745_v58 }
 0x44d   : > { %2762 = vrcp.f32 %v1109_v32 }
 0x44e   : > { %2486 = vmatmul.msk.f32.gmra.mxu1 %vm638_vm2, %v1128_v12  ;;  %2514 = vmatmul.msk.f32.gmra.mxu0 %vm376_vm0, %v3377_v4 }
 0x453   : > { %v2763_v34 = vpop.eup %2762 }
 0x454   : > { %v1112_v35 = vpop.xlane.xlu0 %1111  ;;  %v1129_v36 = vmul.f32 %v2763_v34, %v2747_v63 }
 0x455   : > { %2764 = vrcp.f32 %v1112_v35 }
 0x456   : > { %2487 = vmatmul.msk.f32.gmra.mxu1 %vm638_vm2, %v1129_v36  ;;  %2515 = vmatmul.msk.f32.gmra.mxu0 %vm376_vm0, %v3385_v41 }
 0x45b   : > { %v2765_v13 = vpop.eup %2764 }
 0x45c   : > { %v1115_v14 = vpop.xlane.xlu1 %1114  ;;  %v1130_v37 = vmul.f32 %v2765_v13, %v2749_v62  ;;  %v3484_v13 = vpop.f32.mrf.mxu3 }
 0x45d   : > { %2766 = vrcp.f32 %v1115_v14 }
 0x45e   : > { %2488 = vmatmul.msk.f32.gmra.mxu1 %vm638_vm2, %v1130_v37  ;;  %2516 = vmatmul.msk.f32.gmra.mxu0 %vm376_vm0, %v3393_v43 }
 0x463   : > { %v2767_v38 = vpop.eup %2766 }
 0x464   : > { %v1131_v15 = vmul.f32 %v2767_v38, %v2751_v9  ;;  %v3489_v14 = vpop.f32.mrf.mxu3 }
 0x466   : > { %2489 = vmatmul.msk.f32.gmra.mxu1 %vm638_vm2, %v1131_v15  ;;  %2517 = vmatmul.msk.f32.gmra.mxu0 %vm376_vm0, %v3401_v44 }
 0x46c   : > { %v3495_v37 = vpop.f32.mrf.mxu3 }
 0x46e   : > { %2525 = vmatmul.msk.f32.vlgmr.msra.gmra.mxu1 %vm376_vm0, %v3367_v24  ;;  %2518 = vmatmul.msk.f32.gmra.mxu0 %vm376_vm0, %v3409_v46 }
 0x474   : > { %v3499_v38 = vpop.f32.mrf.mxu3 }
 0x476   : > { %2526 = vmatmul.msk.f32.gmra.mxu1 %vm376_vm0, %v3372_v39  ;;  %2519 = vmatmul.msk.f32.gmra.mxu0 %vm376_vm0, %v3419_v49 }
 0x47c   : > { %v3503_v15 = vpop.f32.mrf.mxu3 }
 0x47e   : > { %2527 = vmatmul.msk.f32.gmra.mxu1 %vm376_vm0, %v3377_v4 }
 0x484   : > { %v3505_v40 = vpop.f32.mrf.mxu3 }
 0x486   : > { %2528 = vmatmul.msk.f32.gmra.mxu1 %vm376_vm0, %v3385_v41 }
 0x48c   : > { %v3507_v42 = vpop.f32.mrf.mxu3 }
 0x48e   : > { %2529 = vmatmul.msk.f32.gmra.mxu1 %vm376_vm0, %v3393_v43 }
 0x494   : > { %v3511_v45 = vpop.f32.mrf.mxu3 }
 0x496   : > { %2530 = vmatmul.msk.f32.gmra.mxu1 %vm376_vm0, %v3401_v44 }
 0x49e   : > { %2531 = vmatmul.msk.f32.gmra.mxu1 %vm376_vm0, %v3409_v46 }
 0x4a6   : > { %2532 = vmatmul.msk.f32.gmra.mxu1 %vm376_vm0, %v3419_v49 }
 0x4ab   : > { %v1173_v33 = vpop.f32.mrf.mxu1 }
 0x4ac   : > { %2491 = vmatmul.msk.f32.vlgmr.msra.gmra.mxu2 %vm548_vm1, %v1173_v33  ;;  %v2546_v33 = vld [vmem:[%s3927_s7 + $0x80] sm:$0xff] }
 0x4b3   : > { %v1176_v50 = vpop.f32.mrf.mxu1 }
 0x4b4   : > { %2492 = vmatmul.msk.f32.gmra.mxu2 %vm548_vm1, %v1176_v50 }
 0x4bb   : > { %v1179_v51 = vpop.f32.mrf.mxu1  ;;  %v1356_v9 = vpop.f32.mrf.mxu0 }
 0x4bc   : > { %2493 = vmatmul.msk.f32.gmra.mxu2 %vm548_vm1, %v1179_v51  ;;  %v1357_v21 = vadd.f32 %v2698_v19, %v1356_v9 }
 0x4c3   : > { %v1182_v52 = vpop.f32.mrf.mxu1  ;;  %v1359_v17 = vpop.f32.mrf.mxu0 }
 0x4c4   : > { %2494 = vmatmul.msk.f32.gmra.mxu2 %vm548_vm1, %v1182_v52  ;;  %v1360_v23 = vadd.f32 %v2698_v19, %v1359_v17  ;;  %v2551_v17 = vld [vmem:[%s3927_s7 + $0xa8] sm:$0xff] }
 0x4cb   : > { %v1185_v53 = vpop.f32.mrf.mxu1  ;;  %v1362_v22 = vpop.f32.mrf.mxu0 }
 0x4cc   : > { %2495 = vmatmul.msk.f32.gmra.mxu2 %vm548_vm1, %v1185_v53  ;;  %v1363_v26 = vadd.f32 %v2698_v19, %v1362_v22  ;;  %v2552_v22 = vld [vmem:[%s3927_s7 + $0xb0] sm:$0xff] }
 0x4d3   : > { %v1188_v54 = vpop.f32.mrf.mxu1  ;;  %v1365_v25 = vpop.f32.mrf.mxu0 }
 0x4d4   : > { %2496 = vmatmul.msk.f32.gmra.mxu2 %vm548_vm1, %v1188_v54  ;;  %v1366_v29 = vadd.f32 %v2698_v19, %v1365_v25  ;;  %v2547_v54 = vld [vmem:[%s3927_s7 + $0x88] sm:$0xff] }
 0x4db   : > { %v1191_v56 = vpop.f32.mrf.mxu1  ;;  %v1368_v27 = vpop.f32.mrf.mxu0 }
 0x4dc   : > { %2497 = vmatmul.msk.f32.gmra.mxu2 %vm548_vm1, %v1191_v56  ;;  %v1369_v10 = vadd.f32 %v2698_v19, %v1368_v27 }
 0x4e3   : > { %v1194_v57 = vpop.f32.mrf.mxu1  ;;  %v1371_v11 = vpop.f32.mrf.mxu0 }
 0x4e4   : > { %2498 = vmatmul.msk.f32.gmra.mxu2 %vm548_vm1, %v1194_v57  ;;  %v1372_v32 = vadd.f32 %v2698_v19, %v1371_v11 }
 0x4eb   : > { %v1407_v58 = vpop.f32.mrf.mxu1  ;;  %v1374_v12 = vpop.f32.mrf.mxu0 }
 0x4ec   : > { %v1408_v16 = vadd.f32 %v2697_v0, %v1407_v58  ;;  %2538 = vmatmul.msk.f32.vlgmr.msrb.gmra.mxu2 %vm376_vm0, %v3367_v24  ;;  %v1375_v34 = vadd.f32 %v2698_v19, %v1374_v12 }
 0x4f3   : > { %v1410_v59 = vpop.f32.mrf.mxu1  ;;  %v1377_v35 = vpop.f32.mrf.mxu0 }
 0x4f4   : > { %v1411_v18 = vadd.f32 %v2697_v0, %v1410_v59  ;;  %2539 = vmatmul.msk.f32.gmra.mxu2 %vm376_vm0, %v3372_v39  ;;  %v1378_v36 = vadd.f32 %v2698_v19, %v1377_v35  ;;  %v2602_v35 = vld [vmem:[%s3922_s2 + $0x70] sm:$0xff] }
 0x4fb   : > { %v1413_v61 = vpop.f32.mrf.mxu1 }
 0x4fc   : > { %v1414_v3 = vadd.f32 %v2697_v0, %v1413_v61  ;;  %2540 = vmatmul.msk.f32.gmra.mxu2 %vm376_vm0, %v3377_v4  ;;  %v2548_v61 = vld [vmem:[%s3927_s7 + $0x90] sm:$0xff] }
 0x503   : > { %v1416_v55 = vpop.f32.mrf.mxu1 }
 0x504   : > { %v1417_v8 = vadd.f32 %v2697_v0, %v1416_v55  ;;  %2541 = vmatmul.msk.f32.gmra.mxu2 %vm376_vm0, %v3385_v41 }
 0x50b   : > { %v1419_v48 = vpop.f32.mrf.mxu1 }
 0x50c   : > { %v1420_v7 = vadd.f32 %v2697_v0, %v1419_v48  ;;  %2542 = vmatmul.msk.f32.gmra.mxu2 %vm376_vm0, %v3393_v43 }
 0x513   : > { %v1422_v63 = vpop.f32.mrf.mxu1 }
 0x514   : > { %v1423_v5 = vadd.f32 %v2697_v0, %v1422_v63  ;;  %2543 = vmatmul.msk.f32.gmra.mxu2 %vm376_vm0, %v3401_v44 }
 0x51b   : > { %v1425_v60 = vpop.f32.mrf.mxu1 }
 0x51c   : > { %v1426_v62 = vadd.f32 %v2697_v0, %v1425_v60  ;;  %2544 = vmatmul.msk.f32.gmra.mxu2 %vm376_vm0, %v3409_v46  ;;  %v2549_v60 = vld [vmem:[%s3927_s7 + $0x98] sm:$0xff] }
 0x523   : > { %v1428_v2 = vpop.f32.mrf.mxu1 }
 0x524   : > { %v1429_v1 = vadd.f32 %v2697_v0, %v1428_v2  ;;  %2545 = vmatmul.msk.f32.gmra.mxu2 %vm376_vm0, %v3419_v49 }
 0x526   : > { %2554 = vmatpush.xpose.msk.msrb.mxu3 %vm548_vm1, %v1429_v1 }
 0x52a   : > { %2555 = vmatpush.xpose.msk.msrb.mxu3 %vm548_vm1, %v1426_v62 }
 0x52e   : > { %2556 = vmatpush.xpose.msk.msrb.mxu3 %vm548_vm1, %v1423_v5  ;;  %v2550_v5 = vld [vmem:[%s3927_s7 + $0xa0] sm:$0xff] }
 0x52f   : > { %v3509_v28 = vpop.f32.mrf.mxu2 }
 0x532   : > { %2557 = vmatpush.xpose.msk.msrb.mxu3 %vm548_vm1, %v1420_v7 }
 0x536   : > { %2558 = vmatpush.xpose.msk.msrb.mxu3 %vm548_vm1, %v1417_v8 }
 0x537   : > { %v3513_v47 = vpop.f32.mrf.mxu2 }
 0x53a   : > { %2559 = vmatpush.xpose.msk.msrb.mxu3 %vm548_vm1, %v1414_v3 }
 0x53e   : > { %2560 = vmatpush.xpose.msk.msrb.mxu3 %vm548_vm1, %v1411_v18 }
 0x53f   : > { %v3522_v53 = vpop.f32.mrf.mxu2 }
 0x542   : > { %2561 = vmatpush.xpose.msk.msrb.mxu3 %vm548_vm1, %v1408_v16 }
 0x545   : > { %2562 = vmatmul.msk.f32.vlgmr.msrb.gmra.mxu3 %vm548_vm1, %v1357_v21 }
 0x547   : > { %v3531_v59 = vpop.f32.mrf.mxu2 }
 0x54d   : > { %2563 = vmatmul.msk.f32.gmra.mxu3 %vm548_vm1, %v1360_v23 }
 0x54f   : > { %v3543_v0 = vpop.f32.mrf.mxu2 }
 0x555   : > { %2564 = vmatmul.msk.f32.gmra.mxu3 %vm548_vm1, %v1363_v26 }
 0x557   : > { %v3554_v8 = vpop.f32.mrf.mxu2 }
 0x55d   : > { %2565 = vmatmul.msk.f32.gmra.mxu3 %vm548_vm1, %v1366_v29  ;;  %v2553_v29 = vld [vmem:[%s3927_s7 + $0xb8] sm:$0xff] }
 0x55f   : > { %v3565_v21 = vpop.f32.mrf.mxu2 }
 0x565   : > { %2566 = vmatmul.msk.f32.gmra.mxu3 %vm548_vm1, %v1369_v10 }
 0x567   : > { %v3574_v27 = vpop.f32.mrf.mxu2 }
 0x56d   : > { %2567 = vmatmul.msk.f32.gmra.mxu3 %vm548_vm1, %v1372_v32 }
 0x56f   : > { %v1458_v10 = vpop.f32.mrf.mxu2 }
 0x575   : > { %2568 = vmatmul.msk.f32.gmra.mxu3 %vm548_vm1, %v1375_v34  ;;  %v2603_v34 = vld [vmem:[%s3922_s2 + $0x78] sm:$0xff] }
 0x576   : > { %1881 = vmatpush.msra.mxu3 %v2603_v34 }
 0x577   : > { %v1461_v31 = vpop.f32.mrf.mxu2 }
 0x578   : > { %1882 = vmatpush.msra.mxu3 %v2602_v35 }
 0x57d   : > { %2569 = vmatmul.msk.f32.gmra.mxu3 %vm548_vm1, %v1378_v36  ;;  %v2601_v36 = vld [vmem:[%s3922_s2 + $0x68] sm:$0xff] }
 0x57e   : > { %1883 = vmatpush.msra.mxu3 %v2601_v36 }
 0x57f   : > { %v1464_v11 = vpop.f32.mrf.mxu2 }
 0x587   : > { %v1467_v32 = vpop.f32.mrf.mxu2 }
 0x58f   : > { %v1470_v12 = vpop.f32.mrf.mxu2 }
 0x5c8   : > { %v1556_v50 = vpop.f32.mrf.mxu3 }
 0x5c9   : > { %v3518_v51 = vadd.f32 %v2546_v33, %v1556_v50  ;;  %v1473_v33 = vpop.f32.mrf.mxu2  ;;  %v2600_v50 = vld [vmem:[%s3922_s2 + $0x60] sm:$0xff] }
 0x5ca   : > { %1884 = vmatpush.msra.mxu3 %v2600_v50 }
 0x5cb   : > { %v1580_v52 = vsel %vm638_vm2, %v3518_v51, -inf  ;;  %2605 = vmatmul.msk.f32.vlgmr.msra.gmra.mxu3 %vm376_vm0, %v3367_v24 }
 0x5cc   : > { %1581 = vmax.xlane.f32.xlu2 %v1580_v52 }
 0x5d0   : > { %v1559_v56 = vpop.f32.mrf.mxu3 }
 0x5d1   : > { %v3527_v57 = vadd.f32 %v2547_v54, %v1559_v56  ;;  %v1476_v52 = vpop.f32.mrf.mxu2 }
 0x5d3   : > { %v1583_v58 = vsel %vm638_vm2, %v3527_v57, -inf  ;;  %2606 = vmatmul.msk.f32.gmra.mxu3 %vm376_vm0, %v3372_v39 }
 0x5d4   : > { %1584 = vmax.xlane.f32.xlu0 %v1583_v58  ;;  %v2699_v58 = vld [vmem:[%s3926_s6 + $0x2] ss:$0 sm:$0xff] }
 0x5d8   : > { %v1562_v55 = vpop.f32.mrf.mxu3 }
 0x5d9   : > { %v3536_v48 = vadd.f32 %v2548_v61, %v1562_v55  ;;  %v1479_v55 = vpop.f32.mrf.mxu2 }
 0x5db   : > { %v1586_v63 = vsel %vm638_vm2, %v3536_v48, -inf  ;;  %2607 = vmatmul.msk.f32.gmra.mxu3 %vm376_vm0, %v3377_v4 }
 0x5dc   : > { %1587 = vmax.xlane.f32.xlu1 %v1586_v63  ;;  %v1477_v63 = vadd.f32 %v2699_v58, %v1476_v52 }
 0x5e0   : > { %v1565_v2 = vpop.f32.mrf.mxu3 }
 0x5e1   : > { %v3545_v1 = vadd.f32 %v2549_v60, %v1565_v2  ;;  %v1480_v60 = vadd.f32 %v2699_v58, %v1479_v55 }
 0x5e3   : > { %v1589_v62 = vsel %vm638_vm2, %v3545_v1, -inf  ;;  %1700 = vmatpush.msrb.mxu0 %v1480_v60  ;;  %2608 = vmatmul.msk.f32.gmra.mxu3 %vm376_vm0, %v3385_v41 }
 0x5e4   : > { %1590 = vmax.xlane.f32.xlu2 %v1589_v62  ;;  %v1474_v62 = vadd.f32 %v2699_v58, %v1473_v33 }
 0x5e5   : > { %1701 = vmatpush.msrb.mxu0 %v1477_v63 }
 0x5e7   : > { %1702 = vmatpush.msrb.mxu0 %v1474_v62 }
 0x5e8   : > { %v1568_v7 = vpop.f32.mrf.mxu3 }
 0x5e9   : > { %v3552_v9 = vadd.f32 %v2550_v5, %v1568_v7  ;;  %v1471_v7 = vadd.f32 %v2699_v58, %v1470_v12 }
 0x5eb   : > { %v1592_v3 = vsel %vm638_vm2, %v3552_v9, -inf  ;;  %1703 = vmatpush.msrb.mxu0 %v1471_v7  ;;  %2609 = vmatmul.msk.f32.gmra.mxu3 %vm376_vm0, %v3393_v43 }
 0x5ec   : > { %1593 = vmax.xlane.f32.xlu0 %v1592_v3 }
 0x5f0   : > { %v1571_v18 = vpop.f32.mrf.mxu3 }
 0x5f1   : > { %v3561_v19 = vadd.f32 %v2551_v17, %v1571_v18  ;;  %v1468_v17 = vadd.f32 %v2699_v58, %v1467_v32 }
 0x5f3   : > { %v1595_v16 = vsel %vm638_vm2, %v3561_v19, -inf  ;;  %1704 = vmatpush.msrb.mxu0 %v1468_v17  ;;  %2610 = vmatmul.msk.f32.gmra.mxu3 %vm376_vm0, %v3401_v44 }
 0x5f4   : > { %1596 = vmax.xlane.f32.xlu1 %v1595_v16  ;;  %v1465_v16 = vadd.f32 %v2699_v58, %v1464_v11 }
 0x5f6   : > { %1705 = vmatpush.msrb.mxu0 %v1465_v16 }
 0x5f8   : > { %v1574_v23 = vpop.f32.mrf.mxu3 }
 0x5f9   : > { %v3570_v25 = vadd.f32 %v2552_v22, %v1574_v23  ;;  %v1462_v22 = vadd.f32 %v2699_v58, %v1461_v31 }
 0x5fb   : > { %v1598_v26 = vsel %vm638_vm2, %v3570_v25, -inf  ;;  %1706 = vmatpush.msrb.mxu0 %v1462_v22  ;;  %2611 = vmatmul.msk.f32.gmra.mxu3 %vm376_vm0, %v3409_v46 }
 0x5fc   : > { %1599 = vmax.xlane.f32.xlu2 %v1598_v26  ;;  %v1459_v26 = vadd.f32 %v2699_v58, %v1458_v10 }
 0x5fe   : > { %1707 = vmatpush.msrb.mxu0 %v1459_v26 }
 0x600   : > { %v1577_v6 = vpop.f32.mrf.mxu3 }
 0x601   : > { %v3579_v30 = vadd.f32 %v2553_v29, %v1577_v6 }
 0x603   : > { %v1601_v20 = vsel %vm638_vm2, %v3579_v30, -inf  ;;  %2612 = vmatmul.msk.f32.gmra.mxu3 %vm376_vm0, %v3419_v49 }
 0x604   : > { %1602 = vmax.xlane.f32.xlu1 %v1601_v20 }
 0x63f   : > { %v1582_v54 = vpop.xlane.xlu2 %1581 }
 0x640   : > { %v1604_v56 = vsub.f32 %v3518_v51, %v1582_v54 }
 0x642   : > { %v1612_v61 = vmul.f32 1.442695, %v1604_v56 }
 0x644   : > { %2768 = vpow2.f32 %v1612_v61 }
 0x647   : > { %v1585_v2 = vpop.xlane.xlu0 %1584 }
 0x648   : > { %v1605_v5 = vsub.f32 %v3527_v57, %v1585_v2 }
 0x64a   : > { %v3606_v51 = vpop.eup %2768  ;;  %v1614_v3 = vmul.f32 1.442695, %v1605_v5 }
 0x64b   : > { %v1628_v18 = vsel %vm638_vm2, %v3606_v51, 0.0 }
 0x64c   : > { %2770 = vpow2.f32 %v1614_v3  ;;  %1629 = vadd.xlane.f32.xlu0 %v1628_v18 }
 0x64e   : > { %v3651_v3 = vpop.f32.mrf.mxu3 }
 0x64f   : > { %v1588_v23 = vpop.xlane.xlu1 %1587 }
 0x650   : > { %v1606_v57 = vsub.f32 %v3536_v48, %v1588_v23 }
 0x652   : > { %v3613_v29 = vpop.eup %2770  ;;  %v1616_v6 = vmul.f32 1.442695, %v1606_v57 }
 0x653   : > { %v1631_v20 = vsel %vm638_vm2, %v3613_v29, 0.0 }
 0x654   : > { %2772 = vpow2.f32 %v1616_v6  ;;  %1632 = vadd.xlane.f32.xlu2 %v1631_v20 }
 0x656   : > { %v3653_v18 = vpop.f32.mrf.mxu3 }
 0x657   : > { %v1591_v31 = vpop.xlane.xlu2 %1590 }
 0x658   : > { %v1607_v11 = vsub.f32 %v3545_v1, %v1591_v31 }
 0x65a   : > { %v2773_v32 = vpop.eup %2772  ;;  %v1618_v48 = vmul.f32 1.442695, %v1607_v11  ;;  %v2589_v11 = vld [vmem:[%s3921_s1 + $0x70] sm:$0xff] }
 0x65b   : > { %v1634_v10 = vsel %vm638_vm2, %v2773_v32, 0.0 }
 0x65c   : > { %2774 = vpow2.f32 %v1618_v48  ;;  %1635 = vadd.xlane.f32.xlu0 %v1634_v10 }
 0x65e   : > { %v1892_v57 = vpop.f32.mrf.mxu3 }
 0x65f   : > { %v1594_v12 = vpop.xlane.xlu0 %1593 }
 0x660   : > { %v1608_v34 = vsub.f32 %v3552_v9, %v1594_v12 }
 0x662   : > { %v3624_v35 = vpop.eup %2774  ;;  %v1620_v36 = vmul.f32 1.442695, %v1608_v34  ;;  %v2587_v34 = vld [vmem:[%s3921_s1 + $0x60] sm:$0xff] }
 0x663   : > { %v1637_v33 = vsel %vm638_vm2, %v3624_v35, 0.0 }
 0x664   : > { %2776 = vpow2.f32 %v1620_v36  ;;  %1638 = vadd.xlane.f32.xlu1 %v1637_v33 }
 0x666   : > { %v1895_v31 = vpop.f32.mrf.mxu3 }
 0x667   : > { %v1597_v1 = vpop.xlane.xlu1 %1596 }
 0x668   : > { %v1609_v50 = vsub.f32 %v3561_v19, %v1597_v1 }
 0x66a   : > { %v3631_v52 = vpop.eup %2776  ;;  %v1622_v54 = vmul.f32 1.442695, %v1609_v50  ;;  %v2578_v50 = vld [vmem:[%s3928_s8 + $0x10] sm:$0xff] }
 0x66b   : > { %v1640_v9 = vsel %vm638_vm2, %v3631_v52, 0.0  ;;  %1774 = vmatpush.msrb.mxu1 %v2578_v50 }
 0x66c   : > { %2778 = vpow2.f32 %v1622_v54  ;;  %1641 = vadd.xlane.f32.xlu2 %v1640_v9 }
 0x66e   : > { %v1898_v12 = vpop.f32.mrf.mxu3 }
 0x66f   : > { %v1600_v56 = vpop.xlane.xlu2 %1599 }
 0x670   : > { %v1610_v58 = vsub.f32 %v3570_v25, %v1600_v56 }
 0x672   : > { %v3638_v61 = vpop.eup %2778  ;;  %v1624_v55 = vmul.f32 1.442695, %v1610_v58 }
 0x673   : > { %v1643_v19 = vsel %vm638_vm2, %v3638_v61, 0.0 }
 0x674   : > { %2780 = vpow2.f32 %v1624_v55  ;;  %1644 = vadd.xlane.f32.xlu0 %v1643_v19  ;;  %v2700_v55 = vld [vmem:[%s3925_s5 + $0x3] ss:$0 sm:$0xff] }
 0x676   : > { %v1901_v1 = vpop.f32.mrf.mxu3 }
 0x677   : > { %v1603_v63 = vpop.xlane.xlu1 %1602 }
 0x678   : > { %v1611_v60 = vsub.f32 %v3579_v30, %v1603_v63  ;;  %v2590_v30 = vld [vmem:[%s3921_s1 + $0x78] sm:$0xff] }
 0x679   : > { %1830 = vmatpush.msra.mxu2 %v2590_v30  ;;  %v1902_v30 = vadd.f32 %v2700_v55, %v1901_v1 }
 0x67a   : > { %v3643_v2 = vpop.eup %2780  ;;  %v1626_v62 = vmul.f32 1.442695, %v1611_v60 }
 0x67b   : > { %v1646_v5 = vsel %vm638_vm2, %v3643_v2, 0.0  ;;  %1831 = vmatpush.msra.mxu2 %v2589_v11 }
 0x67c   : > { %2782 = vpow2.f32 %v1626_v62  ;;  %1647 = vadd.xlane.f32.xlu1 %v1646_v5 }
 0x682   : > { %v3647_v25 = vpop.eup %2782 }
 0x683   : > { %v1649_v7 = vsel %vm638_vm2, %v3647_v25, 0.0 }
 0x684   : > { %1650 = vadd.xlane.f32.xlu2 %v1649_v7 }
 0x6bf   : > { %v1630_v17 = vpop.xlane.xlu0 %1629 }
 0x6c0   : > { %2784 = vrcp.f32 %v1630_v17 }
 0x6c6   : > { %v2785_v16 = vpop.eup %2784 }
 0x6c7   : > { %v1660_v22 = vmul.f32 %v2785_v16, %v3606_v51  ;;  %v1633_v23 = vpop.xlane.xlu2 %1632 }
 0x6c8   : > { %2786 = vrcp.f32 %v1633_v23  ;;  %v1896_v23 = vadd.f32 %v2700_v55, %v1895_v31 }
 0x6c9   : > { %2570 = vmatmul.msk.f32.vlgmr.msrb.gmra.mxu0 %vm638_vm2, %v1660_v22 }
 0x6ce   : > { %v2787_v26 = vpop.eup %2786 }
 0x6cf   : > { %v1636_v6 = vpop.xlane.xlu0 %1635  ;;  %v1661_v20 = vmul.f32 %v2787_v26, %v3613_v29  ;;  %v2588_v29 = vld [vmem:[%s3921_s1 + $0x68] sm:$0xff]  ;;  %v1890_v26 = vadd.f32 %v2700_v55, %v3653_v18 }
 0x6d0   : > { %2788 = vrcp.f32 %v1636_v6  ;;  %1832 = vmatpush.msra.mxu2 %v2588_v29  ;;  %v1887_v6 = vadd.f32 %v2700_v55, %v3651_v3 }
 0x6d1   : > { %2571 = vmatmul.msk.f32.gmra.mxu0 %vm638_vm2, %v1661_v20 }
 0x6d2   : > { %1833 = vmatpush.msra.mxu2 %v2587_v34 }
 0x6d3   : > { %2592 = vmatmul.msk.f32.vlgmr.msra.gmra.mxu2 %vm376_vm0, %v3367_v24 }
 0x6d6   : > { %v2789_v48 = vpop.eup %2788 }
 0x6d7   : > { %v1639_v51 = vpop.xlane.xlu1 %1638  ;;  %v1662_v10 = vmul.f32 %v2789_v48, %v2773_v32 }
 0x6d8   : > { %2790 = vrcp.f32 %v1639_v51 }
 0x6d9   : > { %2572 = vmatmul.msk.f32.gmra.mxu0 %vm638_vm2, %v1662_v10 }
 0x6db   : > { %2593 = vmatmul.msk.f32.gmra.mxu2 %vm376_vm0, %v3372_v39 }
 0x6de   : > { %v2791_v36 = vpop.eup %2790 }
 0x6df   : > { %v1642_v33 = vpop.xlane.xlu2 %1641  ;;  %v1663_v32 = vmul.f32 %v2791_v36, %v3624_v35  ;;  %v1904_v35 = vpop.f32.mrf.mxu3 }
 0x6e0   : > { %2792 = vrcp.f32 %v1642_v33  ;;  %v1905_v62 = vadd.f32 %v2700_v55, %v1904_v35 }
 0x6e1   : > { %2573 = vmatmul.msk.f32.gmra.mxu0 %vm638_vm2, %v1663_v32 }
 0x6e3   : > { %2594 = vmatmul.msk.f32.gmra.mxu2 %vm376_vm0, %v3377_v4 }
 0x6e6   : > { %v2793_v54 = vpop.eup %2792 }
 0x6e7   : > { %v1645_v9 = vpop.xlane.xlu0 %1644  ;;  %v1664_v56 = vmul.f32 %v2793_v54, %v3631_v52  ;;  %v1907_v60 = vpop.f32.mrf.mxu3 }
 0x6e8   : > { %2794 = vrcp.f32 %v1645_v9  ;;  %v1908_v52 = vadd.f32 %v2700_v55, %v1907_v60  ;;  %v2615_v60 = vld [vmem:[%s3923_s3 + $0x70] sm:$0xff] }
 0x6e9   : > { %2574 = vmatmul.msk.f32.gmra.mxu0 %vm638_vm2, %v1664_v56 }
 0x6ea   : > { %2634 = vmatpush.xpose.msk.msra.mxu1 %vm548_vm1, %v1908_v52 }
 0x6eb   : > { %2595 = vmatmul.msk.f32.gmra.mxu2 %vm376_vm0, %v3385_v41 }
 0x6ee   : > { %v2795_v58 = vpop.eup %2794  ;;  %2635 = vmatpush.xpose.msk.msra.mxu1 %vm548_vm1, %v1905_v62  ;;  %v2614_v62 = vld [vmem:[%s3923_s3 + $0x68] sm:$0xff] }
 0x6ef   : > { %v1648_v19 = vpop.xlane.xlu1 %1647  ;;  %v1665_v63 = vmul.f32 %v2795_v58, %v3638_v61  ;;  %v1899_v61 = vadd.f32 %v2700_v55, %v1898_v12  ;;  %v2701_v12 = vld [vmem:[%s3924_s4 + $0x3] ss:$0 sm:$0xff] }
 0x6f0   : > { %2796 = vrcp.f32 %v1648_v19 }
 0x6f1   : > { %2575 = vmatmul.msk.f32.gmra.mxu0 %vm638_vm2, %v1665_v63  ;;  %v2616_v63 = vld [vmem:[%s3923_s3 + $0x78] sm:$0xff] }
 0x6f2   : > { %2636 = vmatpush.xpose.msk.msra.mxu1 %vm548_vm1, %v1902_v30  ;;  %1932 = vmatpush.msra.mxu0 %v2616_v63 }
 0x6f3   : > { %2596 = vmatmul.msk.f32.gmra.mxu2 %vm376_vm0, %v3393_v43 }
 0x6f4   : > { %1933 = vmatpush.msra.mxu0 %v2615_v60 }
 0x6f6   : > { %v2797_v5 = vpop.eup %2796  ;;  %2637 = vmatpush.xpose.msk.msra.mxu1 %vm548_vm1, %v1899_v61  ;;  %1934 = vmatpush.msra.mxu0 %v2614_v62 }
 0x6f7   : > { %v1651_v7 = vpop.xlane.xlu2 %1650  ;;  %v1666_v17 = vmul.f32 %v2797_v5, %v3643_v2  ;;  %v1893_v2 = vadd.f32 %v2700_v55, %v1892_v57  ;;  %v2613_v5 = vld [vmem:[%s3923_s3 + $0x60] sm:$0xff] }
 0x6f8   : > { %2798 = vrcp.f32 %v1651_v7  ;;  %1935 = vmatpush.msra.mxu0 %v2613_v5 }
 0x6f9   : > { %2576 = vmatmul.msk.f32.gmra.mxu0 %vm638_vm2, %v1666_v17 }
 0x6fa   : > { %2638 = vmatpush.xpose.msk.msra.mxu1 %vm548_vm1, %v1896_v23 }
 0x6fb   : > { %2597 = vmatmul.msk.f32.gmra.mxu2 %vm376_vm0, %v3401_v44 }
 0x6fe   : > { %v2799_v16 = vpop.eup %2798  ;;  %2639 = vmatpush.xpose.msk.msra.mxu1 %vm548_vm1, %v1893_v2 }
 0x6ff   : > { %v1667_v22 = vmul.f32 %v2799_v16, %v3647_v25 }
 0x701   : > { %2577 = vmatmul.msk.f32.gmra.mxu0 %vm638_vm2, %v1667_v22 }
 0x702   : > { %2640 = vmatpush.xpose.msk.msra.mxu1 %vm548_vm1, %v1890_v26 }
 0x703   : > { %2598 = vmatmul.msk.f32.gmra.mxu2 %vm376_vm0, %v3409_v46 }
 0x706   : > { %2641 = vmatpush.xpose.msk.msra.mxu1 %vm548_vm1, %v1887_v6 }
 0x709   : > { %2618 = vmatmul.msk.f32.vlgmr.msra.gmra.mxu0 %vm376_vm0, %v3367_v24 }
 0x70b   : > { %2599 = vmatmul.msk.f32.gmra.mxu2 %vm376_vm0, %v3419_v49 }
 0x711   : > { %2619 = vmatmul.msk.f32.gmra.mxu0 %vm376_vm0, %v3372_v39 }
 0x719   : > { %2620 = vmatmul.msk.f32.gmra.mxu0 %vm376_vm0, %v3377_v4 }
 0x721   : > { %2621 = vmatmul.msk.f32.gmra.mxu0 %vm376_vm0, %v3385_v41  ;;  %v2626_v41 = vld [vmem:[%s3927_s7 + $0xc0] sm:$0xff] }
 0x729   : > { %2622 = vmatmul.msk.f32.gmra.mxu0 %vm376_vm0, %v3393_v43 }
 0x731   : > { %2623 = vmatmul.msk.f32.gmra.mxu0 %vm376_vm0, %v3401_v44  ;;  %v2627_v44 = vld [vmem:[%s3927_s7 + $0xc8] sm:$0xff] }
 0x739   : > { %2624 = vmatmul.msk.f32.gmra.mxu0 %vm376_vm0, %v3409_v46 }
 0x741   : > { %2625 = vmatmul.msk.f32.gmra.mxu0 %vm376_vm0, %v3419_v49  ;;  %v2628_v49 = vld [vmem:[%s3927_s7 + $0xd0] sm:$0xff] }
 0x746   : > { %v1709_v25 = vpop.f32.mrf.mxu0 }
 0x747   : > { %2579 = vmatmul.msk.f32.vlgmr.msrb.gmra.mxu1 %vm548_vm1, %v1709_v25 }
 0x74e   : > { %v1712_v57 = vpop.f32.mrf.mxu0 }
 0x74f   : > { %2580 = vmatmul.msk.f32.gmra.mxu1 %vm548_vm1, %v1712_v57  ;;  %v2629_v57 = vld [vmem:[%s3927_s7 + $0xd8] sm:$0xff] }
 0x756   : > { %v1715_v18 = vpop.f32.mrf.mxu0  ;;  %v1835_v11 = vpop.f32.mrf.mxu2 }
 0x757   : > { %2581 = vmatmul.msk.f32.gmra.mxu1 %vm548_vm1, %v1715_v18  ;;  %v1836_v29 = vadd.f32 %v2701_v12, %v1835_v11 }
 0x75e   : > { %v1718_v3 = vpop.f32.mrf.mxu0  ;;  %v1838_v51 = vpop.f32.mrf.mxu2 }
 0x75f   : > { %2582 = vmatmul.msk.f32.gmra.mxu1 %vm548_vm1, %v1718_v3  ;;  %v1839_v36 = vadd.f32 %v2701_v12, %v1838_v51 }
 0x766   : > { %v1721_v20 = vpop.f32.mrf.mxu0  ;;  %v1841_v34 = vpop.f32.mrf.mxu2 }
 0x767   : > { %2583 = vmatmul.msk.f32.gmra.mxu1 %vm548_vm1, %v1721_v20  ;;  %v1842_v32 = vadd.f32 %v2701_v12, %v1841_v34 }
 0x76e   : > { %v1724_v31 = vpop.f32.mrf.mxu0  ;;  %v1844_v33 = vpop.f32.mrf.mxu2 }
 0x76f   : > { %2584 = vmatmul.msk.f32.gmra.mxu1 %vm548_vm1, %v1724_v31  ;;  %v1845_v50 = vadd.f32 %v2701_v12, %v1844_v33  ;;  %v2630_v31 = vld [vmem:[%s3927_s7 + $0xe0] sm:$0xff] }
 0x776   : > { %v1727_v48 = vpop.f32.mrf.mxu0  ;;  %v1847_v1 = vpop.f32.mrf.mxu2 }
 0x777   : > { %2585 = vmatmul.msk.f32.gmra.mxu1 %vm548_vm1, %v1727_v48  ;;  %v1848_v54 = vadd.f32 %v2701_v12, %v1847_v1 }
 0x77e   : > { %v1730_v10 = vpop.f32.mrf.mxu0  ;;  %v1850_v9 = vpop.f32.mrf.mxu2 }
 0x77f   : > { %2586 = vmatmul.msk.f32.gmra.mxu1 %vm548_vm1, %v1730_v10  ;;  %v1851_v56 = vadd.f32 %v2701_v12, %v1850_v9  ;;  %v2631_v10 = vld [vmem:[%s3927_s7 + $0xe8] sm:$0xff] }
 0x786   : > { %v1853_v35 = vpop.f32.mrf.mxu2 }
 0x787   : > { %2642 = vmatmul.msk.f32.vlgmr.msra.gmra.mxu1 %vm548_vm1, %v1836_v29  ;;  %v1854_v58 = vadd.f32 %v2701_v12, %v1853_v35  ;;  %v1937_v35 = vpop.f32.mrf.mxu0 }
 0x78e   : > { %v1856_v55 = vpop.f32.mrf.mxu2 }
 0x78f   : > { %2643 = vmatmul.msk.f32.gmra.mxu1 %vm548_vm1, %v1839_v36  ;;  %v1857_v19 = vadd.f32 %v2701_v12, %v1856_v55  ;;  %v2632_v36 = vld [vmem:[%s3927_s7 + $0xf0] sm:$0xff] }
 0x797   : > { %2644 = vmatmul.msk.f32.gmra.mxu1 %vm548_vm1, %v1842_v32 }
 0x79f   : > { %2645 = vmatmul.msk.f32.gmra.mxu1 %vm548_vm1, %v1845_v50  ;;  %v2633_v50 = vld [vmem:[%s3927_s7 + $0xf8] sm:$0xff] }
 0x7a7   : > { %2646 = vmatmul.msk.f32.gmra.mxu1 %vm548_vm1, %v1848_v54 }
 0x7af   : > { %2647 = vmatmul.msk.f32.gmra.mxu1 %vm548_vm1, %v1851_v56 }
 0x7b7   : > { %2648 = vmatmul.msk.f32.gmra.mxu1 %vm548_vm1, %v1854_v58  ;;  %v1940_v58 = vpop.f32.mrf.mxu0 }
 0x7bf   : > { %2649 = vmatmul.msk.f32.gmra.mxu1 %vm548_vm1, %v1857_v19  ;;  %v1943_v55 = vpop.f32.mrf.mxu0 }
 0x7c4   : > { %v3739_v52 = vpop.f32.mrf.mxu1 }
 0x7c7   : > { %v1946_v19 = vpop.f32.mrf.mxu0 }
 0x7cc   : > { %v3749_v7 = vpop.f32.mrf.mxu1 }
 0x7cf   : > { %v1949_v63 = vpop.f32.mrf.mxu0 }
 0x7d4   : > { %v3753_v17 = vpop.f32.mrf.mxu1 }
 0x7d7   : > { %v1952_v60 = vpop.f32.mrf.mxu0 }
 0x7dc   : > { %v3757_v30 = vpop.f32.mrf.mxu1 }
 0x7df   : > { %v1955_v62 = vpop.f32.mrf.mxu0 }
 0x7e4   : > { %v3761_v61 = vpop.f32.mrf.mxu1 }
 0x7ec   : > { %v3765_v24 = vpop.f32.mrf.mxu1 }
 0x7f4   : > { %v3769_v39 = vpop.f32.mrf.mxu1 }
 0x7fc   : > { %v3773_v4 = vpop.f32.mrf.mxu1 }
 0x804   : > { %v2035_v43 = vpop.f32.mrf.mxu1 }
 0x805   : > { %v2036_v16 = vadd.f32 %v2626_v41, %v2035_v43  ;;  %v2702_v43 = vld [vmem:[%s3926_s6 + $0x3] ss:$0 sm:$0xff] }
 0x807   : > { %v2059_v22 = vsel %vm638_vm2, %v2036_v16, -inf }
 0x808   : > { %2060 = vmax.xlane.f32.xlu0 %v2059_v22 }
 0x80c   : > { %v2038_v23 = vpop.f32.mrf.mxu1 }
 0x80d   : > { %v2039_v46 = vadd.f32 %v2627_v44, %v2038_v23  ;;  %v1958_v44 = vpop.f32.mrf.mxu0  ;;  %v1956_v23 = vadd.f32 %v2702_v43, %v1955_v62 }
 0x80f   : > { %v2062_v2 = vsel %vm638_vm2, %v2039_v46, -inf }
 0x810   : > { %2063 = vmax.xlane.f32.xlu1 %v2062_v2  ;;  %v1959_v2 = vadd.f32 %v2702_v43, %v1958_v44 }
 0x812   : > { %2179 = vmatpush.msrb.mxu2 %v1959_v2 }
 0x814   : > { %v2041_v26 = vpop.f32.mrf.mxu1  ;;  %2180 = vmatpush.msrb.mxu2 %v1956_v23 }
 0x815   : > { %v3788_v6 = vadd.f32 %v2628_v49, %v2041_v26  ;;  %v1953_v26 = vadd.f32 %v2702_v43, %v1952_v60 }
 0x817   : > { %v2065_v25 = vsel %vm638_vm2, %v3788_v6, -inf  ;;  %2181 = vmatpush.msrb.mxu2 %v1953_v26 }
 0x818   : > { %2066 = vmax.xlane.f32.xlu2 %v2065_v25 }
 0x81c   : > { %v2044_v18 = vpop.f32.mrf.mxu1 }
 0x81d   : > { %v3795_v3 = vadd.f32 %v2629_v57, %v2044_v18  ;;  %v1950_v57 = vadd.f32 %v2702_v43, %v1949_v63 }
 0x81f   : > { %v2068_v20 = vsel %vm638_vm2, %v3795_v3, -inf  ;;  %2182 = vmatpush.msrb.mxu2 %v1950_v57 }
 0x820   : > { %2069 = vmax.xlane.f32.xlu0 %v2068_v20 }
 0x824   : > { %v2047_v11 = vpop.f32.mrf.mxu1 }
 0x825   : > { %v3802_v48 = vadd.f32 %v2630_v31, %v2047_v11  ;;  %v1947_v31 = vadd.f32 %v2702_v43, %v1946_v19  ;;  %v1944_v11 = vadd.f32 %v2702_v43, %v1943_v55 }
 0x827   : > { %v2071_v51 = vsel %vm638_vm2, %v3802_v48, -inf  ;;  %2183 = vmatpush.msrb.mxu2 %v1947_v31 }
 0x828   : > { %2072 = vmax.xlane.f32.xlu1 %v2071_v51  ;;  %v1941_v51 = vadd.f32 %v2702_v43, %v1940_v58 }
 0x829   : > { %2184 = vmatpush.msrb.mxu2 %v1944_v11 }
 0x82b   : > { %2185 = vmatpush.msrb.mxu2 %v1941_v51 }
 0x82c   : > { %v2050_v12 = vpop.f32.mrf.mxu1 }
 0x82d   : > { %v3809_v29 = vadd.f32 %v2631_v10, %v2050_v12 }
 0x82f   : > { %v2074_v34 = vsel %vm638_vm2, %v3809_v29, -inf }
 0x830   : > { %2075 = vmax.xlane.f32.xlu2 %v2074_v34 }
 0x834   : > { %v2053_v33 = vpop.f32.mrf.mxu1 }
 0x835   : > { %v3816_v32 = vadd.f32 %v2632_v36, %v2053_v33 }
 0x837   : > { %v2077_v1 = vsel %vm638_vm2, %v3816_v32, -inf }
 0x838   : > { %2078 = vmax.xlane.f32.xlu0 %v2077_v1 }
 0x83c   : > { %v2056_v54 = vpop.f32.mrf.mxu1 }
 0x83d   : > { %v3823_v9 = vadd.f32 %v2633_v50, %v2056_v54 }
 0x83f   : > { %v2080_v56 = vsel %vm638_vm2, %v3823_v9, -inf }
 0x840   : > { %2081 = vmax.xlane.f32.xlu2 %v2080_v56 }
 0x87b   : > { %v2061_v5 = vpop.xlane.xlu0 %2060 }
 0x87c   : > { %v2083_v41 = vsub.f32 %v2036_v16, %v2061_v5 }
 0x87e   : > { %v2091_v22 = vmul.f32 1.442695, %v2083_v41 }
 0x880   : > { %2800 = vpow2.f32 %v2091_v22 }
 0x883   : > { %v2064_v49 = vpop.xlane.xlu1 %2063 }
 0x884   : > { %v2084_v25 = vsub.f32 %v2039_v46, %v2064_v49  ;;  %v1938_v46 = vadd.f32 %v2702_v43, %v1937_v35 }
 0x886   : > { %v3830_v18 = vpop.eup %2800  ;;  %v2093_v20 = vmul.f32 1.442695, %v2084_v25  ;;  %2186 = vmatpush.msrb.mxu2 %v1938_v46 }
 0x887   : > { %v2107_v16 = vsel %vm638_vm2, %v3830_v18, 0.0 }
 0x888   : > { %2802 = vpow2.f32 %v2093_v20  ;;  %2108 = vadd.xlane.f32.xlu1 %v2107_v16 }
 0x88b   : > { %v2067_v10 = vpop.xlane.xlu2 %2066 }
 0x88c   : > { %v2085_v12 = vsub.f32 %v3788_v6, %v2067_v10 }
 0x88e   : > { %v2803_v34 = vpop.eup %2802  ;;  %v2095_v36 = vmul.f32 1.442695, %v2085_v12 }
 0x88f   : > { %v2110_v33 = vsel %vm638_vm2, %v2803_v34, 0.0 }
 0x890   : > { %2804 = vpow2.f32 %v2095_v36  ;;  %2111 = vadd.xlane.f32.xlu0 %v2110_v33 }
 0x893   : > { %v2070_v1 = vpop.xlane.xlu0 %2069 }
 0x894   : > { %v2086_v50 = vsub.f32 %v3795_v3, %v2070_v1 }
 0x896   : > { %v2805_v54 = vpop.eup %2804  ;;  %v2097_v56 = vmul.f32 1.442695, %v2086_v50 }
 0x897   : > { %v2113_v58 = vsel %vm638_vm2, %v2805_v54, 0.0 }
 0x898   : > { %2806 = vpow2.f32 %v2097_v56  ;;  %2114 = vadd.xlane.f32.xlu1 %v2113_v58 }
 0x89b   : > { %v2073_v6 = vpop.xlane.xlu1 %2072 }
 0x89c   : > { %v2087_v35 = vsub.f32 %v3802_v48, %v2073_v6 }
 0x89e   : > { %v2807_v55 = vpop.eup %2806  ;;  %v2099_v19 = vmul.f32 1.442695, %v2087_v35 }
 0x89f   : > { %v2116_v63 = vsel %vm638_vm2, %v2807_v55, 0.0 }
 0x8a0   : > { %2808 = vpow2.f32 %v2099_v19  ;;  %2117 = vadd.xlane.f32.xlu2 %v2116_v63 }
 0x8a3   : > { %v2076_v60 = vpop.xlane.xlu2 %2075 }
 0x8a4   : > { %v2088_v62 = vsub.f32 %v3809_v29, %v2076_v60 }
 0x8a6   : > { %v2809_v5 = vpop.eup %2808  ;;  %v2101_v3 = vmul.f32 1.442695, %v2088_v62 }
 0x8a7   : > { %v2119_v41 = vsel %vm638_vm2, %v2809_v5, 0.0 }
 0x8a8   : > { %2810 = vpow2.f32 %v2101_v3  ;;  %2120 = vadd.xlane.f32.xlu0 %v2119_v41 }
 0x8ab   : > { %v2079_v43 = vpop.xlane.xlu0 %2078 }
 0x8ac   : > { %v2089_v22 = vsub.f32 %v3816_v32, %v2079_v43 }
 0x8ae   : > { %v2811_v44 = vpop.eup %2810  ;;  %v2103_v48 = vmul.f32 1.442695, %v2089_v22 }
 0x8af   : > { %v2122_v23 = vsel %vm638_vm2, %v2811_v44, 0.0 }
 0x8b0   : > { %2812 = vpow2.f32 %v2103_v48  ;;  %2123 = vadd.xlane.f32.xlu1 %v2122_v23 }
 0x8b3   : > { %v2082_v2 = vpop.xlane.xlu2 %2081 }
 0x8b4   : > { %v2090_v49 = vsub.f32 %v3823_v9, %v2082_v2  ;;  %v1306_v2 = vadd.f32 %v3484_v13, %v3509_v28  ;;  %v1309_v13 = vadd.f32 %v3489_v14, %v3513_v47  ;;  %v1315_v14 = vadd.f32 %v3499_v38, %v3531_v59 }
 0x8b5   : > { %v1321_v38 = vadd.f32 %v3505_v40, %v3554_v8  ;;  %v1327_v40 = vadd.f32 %v3511_v45, %v3574_v27 }
 0x8b6   : > { %v2813_v26 = vpop.eup %2812  ;;  %v2105_v29 = vmul.f32 1.442695, %v2090_v49  ;;  %v1800_v49 = vadd.f32 %v3739_v52, %v1306_v2  ;;  %v1801_v28 = vadd.f32 %v3749_v7, %v1309_v13  ;;  %v1803_v47 = vadd.f32 %v3757_v30, %v1315_v14 }
 0x8b7   : > { %v2125_v25 = vsel %vm638_vm2, %v2813_v26, 0.0  ;;  %v1805_v59 = vadd.f32 %v3765_v24, %v1321_v38  ;;  %v1807_v8 = vadd.f32 %v3773_v4, %v1327_v40 }
 0x8b8   : > { %2814 = vpow2.f32 %v2105_v29  ;;  %2126 = vadd.xlane.f32.xlu2 %v2125_v25 }
 0x8be   : > { %v2815_v57 = vpop.eup %2814 }
 0x8bf   : > { %v2128_v20 = vsel %vm638_vm2, %v2815_v57, 0.0 }
 0x8c0   : > { %2129 = vadd.xlane.f32.xlu0 %v2128_v20 }
 0x8fb   : > { %v2109_v32 = vpop.xlane.xlu1 %2108 }
 0x8fc   : > { %2816 = vrcp.f32 %v2109_v32 }
 0x902   : > { %v2817_v31 = vpop.eup %2816 }
 0x903   : > { %v2139_v16 = vmul.f32 %v2817_v31, %v3830_v18  ;;  %v2112_v11 = vpop.xlane.xlu0 %2111  ;;  %v2658_v18 = vld [vmem:[%s3928_s8 + $0x18] sm:$0xff]  ;;  %v1312_v31 = vadd.f32 %v3495_v37, %v3522_v53  ;;  %v1318_v37 = vadd.f32 %v3503_v15, %v3543_v0  ;;  %v1324_v15 = vadd.f32 %v3507_v42, %v3565_v21 }
 0x904   : > { %2818 = vrcp.f32 %v2112_v11  ;;  %2253 = vmatpush.msrb.mxu3 %v2658_v18 }
 0x905   : > { %2650 = vmatmul.msk.f32.vlgmr.msrb.gmra.mxu2 %vm638_vm2, %v2139_v16  ;;  %v1802_v16 = vadd.f32 %v3753_v17, %v1312_v31  ;;  %v1804_v53 = vadd.f32 %v3761_v61, %v1318_v37  ;;  %v1806_v0 = vadd.f32 %v3769_v39, %v1324_v15 }
 0x90a   : > { %v2819_v9 = vpop.eup %2818 }
 0x90b   : > { %v2115_v51 = vpop.xlane.xlu1 %2114  ;;  %v2140_v10 = vmul.f32 %v2819_v9, %v2803_v34 }
 0x90c   : > { %2820 = vrcp.f32 %v2115_v51 }
 0x90d   : > { %2651 = vmatmul.msk.f32.gmra.mxu2 %vm638_vm2, %v2140_v10 }
 0x912   : > { %v2821_v12 = vpop.eup %2820 }
 0x913   : > { %v2118_v46 = vpop.xlane.xlu2 %2117  ;;  %v2141_v36 = vmul.f32 %v2821_v12, %v2805_v54 }
 0x914   : > { %2822 = vrcp.f32 %v2118_v46 }
 0x915   : > { %2652 = vmatmul.msk.f32.gmra.mxu2 %vm638_vm2, %v2141_v36 }
 0x91a   : > { %v2823_v33 = vpop.eup %2822 }
 0x91b   : > { %v2121_v1 = vpop.xlane.xlu0 %2120  ;;  %v2142_v50 = vmul.f32 %v2823_v33, %v2807_v55 }
 0x91c   : > { %2824 = vrcp.f32 %v2121_v1 }
 0x91d   : > { %2653 = vmatmul.msk.f32.gmra.mxu2 %vm638_vm2, %v2142_v50 }
 0x922   : > { %v2825_v34 = vpop.eup %2824 }
 0x923   : > { %v2124_v56 = vpop.xlane.xlu1 %2123  ;;  %v2143_v58 = vmul.f32 %v2825_v34, %v2809_v5 }
 0x924   : > { %2826 = vrcp.f32 %v2124_v56 }
 0x925   : > { %2654 = vmatmul.msk.f32.gmra.mxu2 %vm638_vm2, %v2143_v58 }
 0x92a   : > { %v2827_v54 = vpop.eup %2826 }
 0x92b   : > { %v2144_v6 = vmul.f32 %v2827_v54, %v2811_v44  ;;  %v2127_v35 = vpop.xlane.xlu2 %2126 }
 0x92c   : > { %2828 = vrcp.f32 %v2127_v35 }
 0x92d   : > { %2655 = vmatmul.msk.f32.gmra.mxu2 %vm638_vm2, %v2144_v6 }
 0x932   : > { %v2829_v55 = vpop.eup %2828 }
 0x933   : > { %v2145_v19 = vmul.f32 %v2829_v55, %v2813_v26  ;;  %v2130_v63 = vpop.xlane.xlu0 %2129  ;;  %v2703_v26 = vld [vmem:[%s3929_s9] ss:$0 sm:$0xff] }
 0x934   : > { %2830 = vrcp.f32 %v2130_v63 }
 0x935   : > { %2656 = vmatmul.msk.f32.gmra.mxu2 %vm638_vm2, %v2145_v19 }
 0x93a   : > { %v2831_v60 = vpop.eup %2830 }
 0x93b   : > { %v2146_v62 = vmul.f32 %v2831_v60, %v2815_v57 }
 0x93d   : > { %2657 = vmatmul.msk.f32.gmra.mxu2 %vm638_vm2, %v2146_v62 }
 0x988   : > { %v2188_v5 = vpop.f32.mrf.mxu2 }
 0x989   : > { %2659 = vmatmul.msk.f32.vlgmr.msrb.gmra.mxu3 %vm548_vm1, %v2188_v5 }
 0x990   : > { %v2191_v3 = vpop.f32.mrf.mxu2 }
 0x991   : > { %2660 = vmatmul.msk.f32.gmra.mxu3 %vm548_vm1, %v2191_v3 }
 0x998   : > { %v2194_v41 = vpop.f32.mrf.mxu2 }
 0x999   : > { %2661 = vmatmul.msk.f32.gmra.mxu3 %vm548_vm1, %v2194_v41 }
 0x9a0   : > { %v2197_v43 = vpop.f32.mrf.mxu2 }
 0x9a1   : > { %2662 = vmatmul.msk.f32.gmra.mxu3 %vm548_vm1, %v2197_v43 }
 0x9a8   : > { %v2200_v22 = vpop.f32.mrf.mxu2 }
 0x9a9   : > { %2663 = vmatmul.msk.f32.gmra.mxu3 %vm548_vm1, %v2200_v22 }
 0x9b0   : > { %v2203_v44 = vpop.f32.mrf.mxu2 }
 0x9b1   : > { %2664 = vmatmul.msk.f32.gmra.mxu3 %vm548_vm1, %v2203_v44 }
 0x9b8   : > { %v2206_v48 = vpop.f32.mrf.mxu2 }
 0x9b9   : > { %2665 = vmatmul.msk.f32.gmra.mxu3 %vm548_vm1, %v2206_v48 }
 0x9c0   : > { %v2209_v23 = vpop.f32.mrf.mxu2 }
 0x9c1   : > { %2666 = vmatmul.msk.f32.gmra.mxu3 %vm548_vm1, %v2209_v23 }
 0xa0c   : > { %v2255_v29 = vpop.f32.mrf.mxu3 }
 0xa0d   : > { %v2279_v25 = vadd.f32 %v2255_v29, %v1800_v49 }
 0xa0f   : > { %v2291_v57 = vadd.f32 %v2703_v26, %v2279_v25 }
 0xa11   : > { %2299 = vst.msk [vmem:[%s3878_s16] sm:$0xff] %vm376_vm0, %v2291_v57 }
 0xa14   : > { %v2258_v52 = vpop.f32.mrf.mxu3 }
 0xa15   : > { %v2280_v20 = vadd.f32 %v2258_v52, %v1801_v28 }
 0xa17   : > { %v2292_v32 = vadd.f32 %v2703_v26, %v2280_v20 }
 0xa19   : > { %2300 = vst.msk [vmem:[%s3878_s16 + $0x8] sm:$0xff] %vm376_vm0, %v2292_v32 }
 0xa1c   : > { %v2261_v11 = vpop.f32.mrf.mxu3 }
 0xa1d   : > { %v2281_v9 = vadd.f32 %v2261_v11, %v1802_v16 }
 0xa1f   : > { %v2293_v51 = vadd.f32 %v2703_v26, %v2281_v9 }
 0xa21   : > { %2301 = vst.msk [vmem:[%s3878_s16 + $0x10] sm:$0xff] %vm376_vm0, %v2293_v51 }
 0xa24   : > { %v2264_v7 = vpop.f32.mrf.mxu3 }
 0xa25   : > { %v2282_v10 = vadd.f32 %v2264_v7, %v1803_v47 }
 0xa27   : > { %v2294_v12 = vadd.f32 %v2703_v26, %v2282_v10 }
 0xa29   : > { %2302 = vst.msk [vmem:[%s3878_s16 + $0x18] sm:$0xff] %vm376_vm0, %v2294_v12 }
 0xa2c   : > { %v2267_v17 = vpop.f32.mrf.mxu3 }
 0xa2d   : > { %v2283_v46 = vadd.f32 %v2267_v17, %v1804_v53 }
 0xa2f   : > { %v2295_v36 = vadd.f32 %v2703_v26, %v2283_v46 }
 0xa31   : > { %2303 = vst.msk [vmem:[%s3878_s16 + $0x20] sm:$0xff] %vm376_vm0, %v2295_v36 }
 0xa34   : > { %v2270_v30 = vpop.f32.mrf.mxu3 }
 0xa35   : > { %v2284_v33 = vadd.f32 %v2270_v30, %v1805_v59 }
 0xa37   : > { %v2296_v1 = vadd.f32 %v2703_v26, %v2284_v33 }
 0xa39   : > { %2304 = vst.msk [vmem:[%s3878_s16 + $0x28] sm:$0xff] %vm376_vm0, %v2296_v1 }
 0xa3c   : > { %v2273_v61 = vpop.f32.mrf.mxu3 }
 0xa3d   : > { %v2285_v50 = vadd.f32 %v2273_v61, %v1806_v0 }
 0xa3f   : > { %v2297_v18 = vadd.f32 %v2703_v26, %v2285_v50 }
 0xa41   : > { %2305 = vst.msk [vmem:[%s3878_s16 + $0x30] sm:$0xff] %vm376_vm0, %v2297_v18 }
 0xa44   : > { %v2276_v24 = vpop.f32.mrf.mxu3 }
 0xa45   : > { %v2286_v34 = vadd.f32 %v2276_v24, %v1807_v8 }
 0xa47   : > { %v2298_v56 = vadd.f32 %v2703_v26, %v2286_v34 }
 0xa49   : > { %2306 = vst.msk [vmem:[%s3878_s16 + $0x38] sm:$0xff] %vm376_vm0, %v2298_v56 }
 0xa4a PF: > { %s20_s13 = sadd.s32 1, %s2846_s13  }
 0xa4b   : > { %p17_p4 = scmp.ge.s32.totalorder %s20_s13, 6  }
 0xa4d   :  { %19 = sbr.rel (!%p17_p4) target bundleno = 1 (0x1), region = 114 }

</bundles_post_ra>
